<compile_context>
chip_gen: v7x
topology: tpu7x:2x2x1
jax: 0.10.0
libtpu: 0.0.40
codegen_flags: <defaults>
</compile_context>

<pallas_src>
import functools

import jax
import jax.numpy as jnp
from jax.experimental import pallas as pl
from jax.experimental.pallas import tpu as pltpu


# ----------------------------------------------------------------------------
# Fused kernel: the entire ConvModel forward for one BB-row batch tile.
# ----------------------------------------------------------------------------
def fused_convmodel_kernel(x_ref, w1c_ref, b1c_ref, w2c_ref, b2s_ref,
                           fw1_ref, fb1_ref, fw2_ref, fb2_ref, fw3_ref, fb3_ref,
                           o_ref, xs_ref, fc_ref):
    """Refs:
      x_ref  : (BB, L)          VMEM  raw input rows of this batch tile
      w1c_ref: (C1*BB, 3)       VMEM  conv1 weights, row c*BB+b -> w1[c, 0, k]
      b1c_ref: (C1*BB, 1)       VMEM  conv1 bias per packed row
      w2c_ref: (C1*BB, C2*3)    VMEM  conv2 weights, [ci*BB+b, co*3+k] -> w2[co, ci, k]
      b2s_ref: (C2,)            SMEM  conv2 bias scalars
      fw1_ref: (fc_in, HD1)     VMEM  fc1 weight (torch fc1.weight.T; fc_in = C2*(L-4))
      fb1_ref: (1, HD1)         VMEM
      fw2_ref: (HD1, HD2)       VMEM
      fb2_ref: (1, HD2)         VMEM
      fw3_ref: (HD2, OUT_PAD)   VMEM  zero-padded to a lane-dense 128-wide slab
      fb3_ref: (1, OUT_PAD)     VMEM
      o_ref  : (BB, OUT_PAD)    VMEM  lane-dense output (sliced to OutDim in wrapper)
      xs_ref : (C1*BB, L+4)     VMEM scratch: zero-padded, channel-replicated input
      fc_ref : (BB, fc_in)      VMEM scratch: flatten(1) slab for the single fc1 matmul
    """
    f32 = jnp.float32
    BB, L = x_ref.shape
    C1BB = b1c_ref.shape[0]
    C1 = C1BB // BB
    C2 = w2c_ref.shape[1] // 3
    P1 = L - 2                    # length after pool1 (kernel=3, stride=1)
    P2 = L - 4                    # length after pool2
    assert xs_ref.shape == (C1BB, L + 4)
    assert fc_ref.shape == (BB, C2 * P2), "fc1 in-features must equal Conv2 * (L - 4)"

    # ---- in-kernel zero padding (2 per side) + conv1-channel replication ------------
    # xs[c*BB + b, :] = [0, 0, x[b, :], 0, 0]   (static slice stores, done once per tile)
    xs_ref[:, 0:2] = jnp.zeros((C1BB, 2), f32)
    xs_ref[:, L + 2:L + 4] = jnp.zeros((C1BB, 2), f32)
    xb = x_ref[...]
    for c in range(C1):
        xs_ref[c * BB:(c + 1) * BB, 2:L + 2] = xb
    xs = xs_ref[...]                                                  # (C1*BB, L+4)

    # ---- stage 1: conv1(pad=1) -> ReLU -> maxpool(3,1), all C1 channels packed on
    # sublanes.  The conv is evaluated on an *extended* window (length L+2): extended[j]
    # equals the real padded-conv1 output at j-1, so pool1 + conv2's zero padding fold
    # into plain lane slices plus a border mask.
    w1c = w1c_ref[...]
    acc1 = (xs[:, 0:L + 2] * w1c[:, 0:1]
            + xs[:, 1:L + 3] * w1c[:, 1:2]
            + xs[:, 2:L + 4] * w1c[:, 2:3])
    y1 = jnp.maximum(acc1 + b1c_ref[...], 0.0)                        # (C1*BB, L+2)
    p1e = jnp.maximum(jnp.maximum(y1[:, 0:L], y1[:, 1:L + 1]), y1[:, 2:L + 2])
    col = jax.lax.broadcasted_iota(jnp.int32, (C1BB, L), 1)
    h1 = jnp.where((col >= 1) & (col <= L - 2), p1e, 0.0)             # == [0, pool1, 0]

    # ---- stage 2: conv2(pad=1) -> ReLU -> maxpool(3,1), sublane-packed multiplies.
    # Tap slices are computed ONCE and reused by every output channel; the contraction
    # over input channels is an aligned 8-row block reduction (no sublane broadcasts).
    taps = (h1[:, 0:P1], h1[:, 1:P1 + 1], h1[:, 2:P1 + 2])            # each (C1*BB, P1)
    w2c = w2c_ref[...]
    for co in range(C2):
        acc2 = jnp.zeros((BB, P1), f32)
        for k in range(3):
            wt = taps[k] * w2c[:, co * 3 + k:co * 3 + k + 1]          # (C1*BB, P1)
            r = wt[0:BB, :]
            for ci in range(1, C1):
                r = r + wt[ci * BB:(ci + 1) * BB, :]                  # sum over ci blocks
            acc2 = acc2 + r
        y2 = jnp.maximum(acc2 + b2s_ref[co], 0.0)                     # (BB, P1)
        p2c = jnp.maximum(jnp.maximum(y2[:, 0:P2], y2[:, 1:P2 + 1]), y2[:, 2:P2 + 2])
        # torch flatten(1) is channel-major -> write this channel's chunk into the slab.
        fc_ref[:, co * P2:(co + 1) * P2] = p2c

    # ---- MLP tail: ONE fc1 matmul on the slab, then fc2/fc3 on the MXU ---------------
    hi = jax.lax.Precision.HIGHEST
    h = jnp.dot(fc_ref[...], fw1_ref[...], precision=hi, preferred_element_type=f32)
    h = jnp.maximum(h + fb1_ref[...], 0.0)
    h = jnp.dot(h, fw2_ref[...], precision=hi, preferred_element_type=f32)
    h = jnp.maximum(h + fb2_ref[...], 0.0)
    o_ref[...] = (jnp.dot(h, fw3_ref[...], precision=hi, preferred_element_type=f32)
                  + fb3_ref[...])


# ----------------------------------------------------------------------------
# pallas_call wrapper
# ----------------------------------------------------------------------------
def conv_model_fused_call(x, packed, bb):
    (w1c, b1c, w2c, b2s, fw1, fb1, fw2, fb2, fw3p, fb3p) = packed
    b_pad, L = x.shape
    out_pad = fw3p.shape[1]
    c2 = w2c.shape[1] // 3
    fc_in = fw1.shape[0]
    # Explicit check that the hard-coded fc1 in-features matches Conv2 * (L - 4).
    assert fc_in == c2 * (L - 4), "fc1 in-features must equal Conv2 * (L - 4)"
    assert b1c.shape[0] % bb == 0 and w2c.shape[0] % bb == 0 and b_pad % bb == 0
    c1bb = b1c.shape[0]
    nbt = b_pad // bb

    def resident(a):  # weights stay VMEM-resident across all batch tiles
        zeros = (0,) * a.ndim
        return pl.BlockSpec(a.shape, lambda i, z=zeros: z)

    smem = pl.BlockSpec(memory_space=pltpu.MemorySpace.SMEM)

    return pl.pallas_call(
        fused_convmodel_kernel,
        out_shape=jax.ShapeDtypeStruct((b_pad, out_pad), jnp.float32),
        grid=(nbt,),                      # batch-tile axis; "parallel" -> uses both v7x TCs
        in_specs=[
            pl.BlockSpec((bb, L), lambda i: (i, 0)),
            resident(w1c), resident(b1c), resident(w2c), smem,
            resident(fw1), resident(fb1), resident(fw2), resident(fb2),
            resident(fw3p), resident(fb3p),
        ],
        out_specs=pl.BlockSpec((bb, out_pad), lambda i: (i, 0)),
        scratch_shapes=[
            pltpu.VMEM((c1bb, L + 4), jnp.float32),   # padded + channel-replicated input
            pltpu.VMEM((bb, fc_in), jnp.float32),     # flatten(1) slab for the fc1 matmul
        ],
        compiler_params=pltpu.CompilerParams(
            dimension_semantics=("parallel",),
            vmem_limit_bytes=32 * 1024 * 1024,        # explicit budget (safe on v5e/v6e/v7x)
        ),
    )(x, w1c, b1c, w2c, b2s, fw1, fb1, fw2, fb2, fw3p, fb3p)


@functools.partial(jax.jit, static_argnames=("out_dim", "bb"))
def conv_model_forward(x, packed, out_dim, bb=8):
    B, L = x.shape
    nbt = -(-B // bb)
    b_pad = nbt * bb
    if b_pad != B:
        # Round the batch up to a full sublane group (coalesce real batches to >=8,
        # ideally 128+, at production to fill the MXU rows with useful work).
        x = jnp.pad(x, ((0, b_pad - B), (0, 0)))
    out = conv_model_fused_call(x, packed, bb)
    return out[:B, :out_dim]


# ----------------------------------------------------------------------------
# Parameter handling (torch layout -> packed kernel layout)
# ----------------------------------------------------------------------------
def init_params(key, c1, c2, hd1, hd2, out_dim, fc_in):
    """Torch-layout parameters (Conv1d: (Cout, Cin, k), Linear: (out, in))."""
    ks = jax.random.split(key, 10)
    n = lambda k, shape, fan: jax.random.normal(k, shape, jnp.float32) / jnp.sqrt(float(fan))
    return {
        "conv1_w": n(ks[0], (c1, 1, 3), 3),
        "conv1_b": n(ks[1], (c1,), 3),
        "conv2_w": n(ks[2], (c2, c1, 3), 3 * c1),
        "conv2_b": n(ks[3], (c2,), 3 * c1),
        "fc1_w": n(ks[4], (hd1, fc_in), fc_in),
        "fc1_b": n(ks[5], (hd1,), fc_in),
        "fc2_w": n(ks[6], (hd2, hd1), hd1),
        "fc2_b": n(ks[7], (hd2,), hd1),
        "fc3_w": n(ks[8], (out_dim, hd2), hd2),
        "fc3_b": n(ks[9], (out_dim,), hd2),
    }


def pack_params(p, bb, out_pad=128):
    """One-time conversion to the fused kernel's layout (bb = batch-tile rows)."""
    c1 = p["conv1_w"].shape[0]
    c2 = p["conv2_w"].shape[0]
    hd1, fc_in = p["fc1_w"].shape
    out_dim, hd2 = p["fc3_w"].shape

    w1c = jnp.repeat(p["conv1_w"][:, 0, :], bb, axis=0)               # (C1*bb, 3)  row c*bb+b
    b1c = jnp.repeat(p["conv1_b"][:, None], bb, axis=0)               # (C1*bb, 1)
    # (C1*bb, C2*3): [ci*bb+b, co*3+k] = w2[co, ci, k]
    w2c = jnp.repeat(jnp.transpose(p["conv2_w"], (1, 0, 2)).reshape(c1, c2 * 3), bb, axis=0)
    b2s = p["conv2_b"]                                                # (C2,) -> SMEM scalars
    fw1 = p["fc1_w"].T                                                # (fc_in, HD1)
    fb1 = p["fc1_b"].reshape(1, -1)
    fw2 = p["fc2_w"].T                                                # (HD1, HD2)
    fb2 = p["fc2_b"].reshape(1, -1)
    fw3 = jnp.zeros((hd2, out_pad), jnp.float32).at[:, :out_dim].set(p["fc3_w"].T)
    fb3 = jnp.zeros((1, out_pad), jnp.float32).at[:, :out_dim].set(p["fc3_b"].reshape(1, -1))
    return (w1c, b1c, w2c, b2s, fw1, fb1, fw2, fb2, fw3, fb3)


# ----------------------------------------------------------------------------
# Pure-JAX reference mirroring the PyTorch forward (full f32 precision)
# ----------------------------------------------------------------------------
def reference_forward(x, p):
    hi = jax.lax.Precision.HIGHEST

    def block(h, w, b):          # conv1d(k=3, pad=1) + relu + maxpool(3, stride=1)
        L = h.shape[2]
        hp_ = jnp.pad(h, ((0, 0), (0, 0), (1, 1)))
        acc = sum(jnp.einsum("oi,bil->bol", w[:, :, k], hp_[:, :, k:k + L], precision=hi)
                  for k in range(3))
        y = jnp.maximum(acc + b[None, :, None], 0.0)
        return jnp.maximum(jnp.maximum(y[:, :, :-2], y[:, :, 1:-1]), y[:, :, 2:])

    h = x[:, None, :]
    h = block(h, p["conv1_w"], p["conv1_b"])
    h = block(h, p["conv2_w"], p["conv2_b"])
    h = h.reshape(h.shape[0], -1)
    h = jnp.maximum(jnp.dot(h, p["fc1_w"].T, precision=hi) + p["fc1_b"], 0.0)
    h = jnp.maximum(jnp.dot(h, p["fc2_w"].T, precision=hi) + p["fc2_b"], 0.0)
    return jnp.dot(h, p["fc3_w"].T, precision=hi) + p["fc3_b"]


if __name__ == "__main__":
    # Small synthetic config consistent with the module's forward.
    hp = {"Conv1": 4, "Conv2": 8, "HD-1": 32, "HD-2": 16, "OutDim": 4}
    B, L = 2, 20
    fc_in = hp["Conv2"] * (L - 4)   # = 128 (module hard-codes 23968 at its production length)

    key = jax.random.PRNGKey(0)
    kx, kp = jax.random.split(key)
    x = jax.random.normal(kx, (B, L), jnp.float32)
    params = init_params(kp, hp["Conv1"], hp["Conv2"], hp["HD-1"], hp["HD-2"],
                         hp["OutDim"], fc_in)
    packed = pack_params(params, bb=8)

    out = conv_model_forward(x, packed, out_dim=hp["OutDim"], bb=8)
    jax.block_until_ready(out)

    ref = reference_forward(x, params)
    assert out.shape == (B, hp["OutDim"]), out.shape
    # Tightened (100x) vs the previous 1e-2: the path is all-f32 (HIGHEST-precision MXU
    # dots), so 1e-4 comfortably passes while catching any packing/layout mistake.
    assert jnp.allclose(out, ref, rtol=1e-4, atol=1e-4), float(jnp.max(jnp.abs(out - ref)))

    print("KERNEL_OK")
</pallas_src>

<mosaic_0001>
module attributes {stable_mosaic.version = 11 : i64} {
  func.func @fused_convmodel_kernel(%arg0: i32, %arg1: memref<8x20xf32, #tpu.memory_space<vmem>>, %arg2: memref<32x3xf32, #tpu.memory_space<vmem>>, %arg3: memref<32x1xf32, #tpu.memory_space<vmem>>, %arg4: memref<32x24xf32, #tpu.memory_space<vmem>>, %arg5: memref<8xf32, #tpu.memory_space<smem>>, %arg6: memref<128x32xf32, #tpu.memory_space<vmem>>, %arg7: memref<1x32xf32, #tpu.memory_space<vmem>>, %arg8: memref<32x16xf32, #tpu.memory_space<vmem>>, %arg9: memref<1x16xf32, #tpu.memory_space<vmem>>, %arg10: memref<16x128xf32, #tpu.memory_space<vmem>>, %arg11: memref<1x128xf32, #tpu.memory_space<vmem>>, %arg12: memref<8x128xf32, #tpu.memory_space<vmem>>, %arg13: memref<32x24xf32, #tpu.memory_space<vmem>>, %arg14: memref<8x128xf32, #tpu.memory_space<vmem>>) attributes {dimension_semantics = [#tpu.dimension_semantics<parallel>], iteration_bounds = array<i64: 1>, scalar_prefetch = 0 : i64, scratch_operands = 2 : i64, tpu.core_type = #tpu.core_type<tc>, window_params = [{transform_indices = @transform_0, window_bounds = array<i64: 8, 20>}, {pipeline_mode = #tpu.pipeline_mode<synchronous>, transform_indices = @transform_1, window_bounds = array<i64: 32, 3>}, {pipeline_mode = #tpu.pipeline_mode<synchronous>, transform_indices = @transform_2, window_bounds = array<i64: 32, 1>}, {pipeline_mode = #tpu.pipeline_mode<synchronous>, transform_indices = @transform_3, window_bounds = array<i64: 32, 24>}, {transform_indices = @transform_4, window_bounds = array<i64: 8>}, {pipeline_mode = #tpu.pipeline_mode<synchronous>, transform_indices = @transform_5, window_bounds = array<i64: 128, 32>}, {pipeline_mode = #tpu.pipeline_mode<synchronous>, transform_indices = @transform_6, window_bounds = array<i64: 1, 32>}, {pipeline_mode = #tpu.pipeline_mode<synchronous>, transform_indices = @transform_7, window_bounds = array<i64: 32, 16>}, {pipeline_mode = #tpu.pipeline_mode<synchronous>, transform_indices = @transform_8, window_bounds = array<i64: 1, 16>}, {pipeline_mode = #tpu.pipeline_mode<synchronous>, transform_indices = @transform_9, window_bounds = array<i64: 16, 128>}, {pipeline_mode = #tpu.pipeline_mode<synchronous>, transform_indices = @transform_10, window_bounds = array<i64: 1, 128>}, {transform_indices = @transform_11, window_bounds = array<i64: 8, 128>}]} {
    %cst = arith.constant 0.000000e+00 : f32
    %0 = vector.broadcast %cst : f32 to vector<32x2xf32>
    %c0 = arith.constant 0 : index
    %c0_0 = arith.constant 0 : index
    %1 = vector.load %arg13[%c0, %c0_0] : memref<32x24xf32, #tpu.memory_space<vmem>>, vector<32x2xf32>
    tpu.vector_store %arg13[%c0, %c0_0], %0 {strides = array<i32>} : memref<32x24xf32, #tpu.memory_space<vmem>>, vector<32x2xf32>,
    %cst_1 = arith.constant 0.000000e+00 : f32
    %2 = vector.broadcast %cst_1 : f32 to vector<32x2xf32>
    %c0_2 = arith.constant 0 : index
    %c22 = arith.constant 22 : index
    %3 = vector.load %arg13[%c0_2, %c22] : memref<32x24xf32, #tpu.memory_space<vmem>>, vector<32x2xf32>
    tpu.vector_store %arg13[%c0_2, %c22], %2 {strides = array<i32>} : memref<32x24xf32, #tpu.memory_space<vmem>>, vector<32x2xf32>,
    %c0_3 = arith.constant 0 : index
    %c0_4 = arith.constant 0 : index
    %4 = vector.load %arg1[%c0_3, %c0_4] : memref<8x20xf32, #tpu.memory_space<vmem>>, vector<8x20xf32>
    %c0_5 = arith.constant 0 : index
    %c2 = arith.constant 2 : index
    %5 = vector.load %arg13[%c0_5, %c2] : memref<32x24xf32, #tpu.memory_space<vmem>>, vector<8x20xf32>
    tpu.vector_store %arg13[%c0_5, %c2], %4 {strides = array<i32>} : memref<32x24xf32, #tpu.memory_space<vmem>>, vector<8x20xf32>,
    %c8 = arith.constant 8 : index
    %c2_6 = arith.constant 2 : index
    %6 = vector.load %arg13[%c8, %c2_6] : memref<32x24xf32, #tpu.memory_space<vmem>>, vector<8x20xf32>
    tpu.vector_store %arg13[%c8, %c2_6], %4 {strides = array<i32>} : memref<32x24xf32, #tpu.memory_space<vmem>>, vector<8x20xf32>,
    %c16 = arith.constant 16 : index
    %c2_7 = arith.constant 2 : index
    %7 = vector.load %arg13[%c16, %c2_7] : memref<32x24xf32, #tpu.memory_space<vmem>>, vector<8x20xf32>
    tpu.vector_store %arg13[%c16, %c2_7], %4 {strides = array<i32>} : memref<32x24xf32, #tpu.memory_space<vmem>>, vector<8x20xf32>,
    %c24 = arith.constant 24 : index
    %c2_8 = arith.constant 2 : index
    %8 = vector.load %arg13[%c24, %c2_8] : memref<32x24xf32, #tpu.memory_space<vmem>>, vector<8x20xf32>
    tpu.vector_store %arg13[%c24, %c2_8], %4 {strides = array<i32>} : memref<32x24xf32, #tpu.memory_space<vmem>>, vector<8x20xf32>,
    %c0_9 = arith.constant 0 : index
    %c0_10 = arith.constant 0 : index
    %9 = vector.load %arg13[%c0_9, %c0_10] : memref<32x24xf32, #tpu.memory_space<vmem>>, vector<32x24xf32>
    %c0_11 = arith.constant 0 : index
    %c0_12 = arith.constant 0 : index
    %10 = vector.load %arg2[%c0_11, %c0_12] : memref<32x3xf32, #tpu.memory_space<vmem>>, vector<32x3xf32>
    %11 = vector.extract_strided_slice %9 {offsets = [0, 0], sizes = [32, 22], strides = [1, 1]} : vector<32x24xf32> to vector<32x22xf32>
    %12 = vector.extract_strided_slice %10 {offsets = [0, 0], sizes = [32, 1], strides = [1, 1]} : vector<32x3xf32> to vector<32x1xf32>
    %13 = vector.broadcast %12 : vector<32x1xf32> to vector<32x22xf32>
    %14 = arith.mulf %11, %13 : vector<32x22xf32>
    %15 = vector.extract_strided_slice %9 {offsets = [0, 1], sizes = [32, 22], strides = [1, 1]} : vector<32x24xf32> to vector<32x22xf32>
    %16 = vector.extract_strided_slice %10 {offsets = [0, 1], sizes = [32, 1], strides = [1, 1]} : vector<32x3xf32> to vector<32x1xf32>
    %17 = vector.broadcast %16 : vector<32x1xf32> to vector<32x22xf32>
    %18 = arith.mulf %15, %17 : vector<32x22xf32>
    %19 = arith.addf %14, %18 : vector<32x22xf32>
    %20 = vector.extract_strided_slice %9 {offsets = [0, 2], sizes = [32, 22], strides = [1, 1]} : vector<32x24xf32> to vector<32x22xf32>
    %21 = vector.extract_strided_slice %10 {offsets = [0, 2], sizes = [32, 1], strides = [1, 1]} : vector<32x3xf32> to vector<32x1xf32>
    %22 = vector.broadcast %21 : vector<32x1xf32> to vector<32x22xf32>
    %23 = arith.mulf %20, %22 : vector<32x22xf32>
    %24 = arith.addf %19, %23 : vector<32x22xf32>
    %c0_13 = arith.constant 0 : index
    %c0_14 = arith.constant 0 : index
    %25 = vector.load %arg3[%c0_13, %c0_14] : memref<32x1xf32, #tpu.memory_space<vmem>>, vector<32x1xf32>
    %26 = vector.broadcast %25 : vector<32x1xf32> to vector<32x22xf32>
    %27 = arith.addf %24, %26 : vector<32x22xf32>
    %cst_15 = arith.constant 0.000000e+00 : f32
    %28 = vector.broadcast %cst_15 : f32 to vector<32x22xf32>
    %29 = arith.maximumf %27, %28 : vector<32x22xf32>
    %30 = vector.extract_strided_slice %29 {offsets = [0, 0], sizes = [32, 20], strides = [1, 1]} : vector<32x22xf32> to vector<32x20xf32>
    %31 = vector.extract_strided_slice %29 {offsets = [0, 1], sizes = [32, 20], strides = [1, 1]} : vector<32x22xf32> to vector<32x20xf32>
    %32 = arith.maximumf %30, %31 : vector<32x20xf32>
    %33 = vector.extract_strided_slice %29 {offsets = [0, 2], sizes = [32, 20], strides = [1, 1]} : vector<32x22xf32> to vector<32x20xf32>
    %34 = arith.maximumf %32, %33 : vector<32x20xf32>
    %35 = tpu.iota {dimensions = array<i32: 1>} : vector<32x20xi32>
    %c1_i32 = arith.constant 1 : i32
    %36 = vector.broadcast %c1_i32 : i32 to vector<32x20xi32>
    %37 = arith.cmpi sge, %35, %36 : vector<32x20xi32>
    %c18_i32 = arith.constant 18 : i32
    %38 = vector.broadcast %c18_i32 : i32 to vector<32x20xi32>
    %39 = arith.cmpi sle, %35, %38 : vector<32x20xi32>
    %40 = arith.andi %37, %39 : vector<32x20xi1>
    %cst_16 = arith.constant 0.000000e+00 : f32
    %41 = vector.broadcast %cst_16 : f32 to vector<32x20xf32>
    %42 = arith.select %40, %34, %41 : vector<32x20xi1>, vector<32x20xf32>
    %43 = vector.extract_strided_slice %42 {offsets = [0, 0], sizes = [32, 18], strides = [1, 1]} : vector<32x20xf32> to vector<32x18xf32>
    %44 = vector.extract_strided_slice %42 {offsets = [0, 1], sizes = [32, 18], strides = [1, 1]} : vector<32x20xf32> to vector<32x18xf32>
    %45 = vector.extract_strided_slice %42 {offsets = [0, 2], sizes = [32, 18], strides = [1, 1]} : vector<32x20xf32> to vector<32x18xf32>
    %c0_17 = arith.constant 0 : index
    %c0_18 = arith.constant 0 : index
    %46 = vector.load %arg4[%c0_17, %c0_18] : memref<32x24xf32, #tpu.memory_space<vmem>>, vector<32x24xf32>
    %cst_19 = arith.constant 0.000000e+00 : f32
    %47 = vector.broadcast %cst_19 : f32 to vector<8x18xf32>
    %48 = vector.extract_strided_slice %46 {offsets = [0, 0], sizes = [32, 1], strides = [1, 1]} : vector<32x24xf32> to vector<32x1xf32>
    %49 = vector.broadcast %48 : vector<32x1xf32> to vector<32x18xf32>
    %50 = arith.mulf %43, %49 : vector<32x18xf32>
    %51 = vector.extract_strided_slice %50 {offsets = [0, 0], sizes = [8, 18], strides = [1, 1]} : vector<32x18xf32> to vector<8x18xf32>
    %52 = vector.extract_strided_slice %50 {offsets = [8, 0], sizes = [8, 18], strides = [1, 1]} : vector<32x18xf32> to vector<8x18xf32>
    %53 = arith.addf %51, %52 : vector<8x18xf32>
    %54 = vector.extract_strided_slice %50 {offsets = [16, 0], sizes = [8, 18], strides = [1, 1]} : vector<32x18xf32> to vector<8x18xf32>
    %55 = arith.addf %53, %54 : vector<8x18xf32>
    %56 = vector.extract_strided_slice %50 {offsets = [24, 0], sizes = [8, 18], strides = [1, 1]} : vector<32x18xf32> to vector<8x18xf32>
    %57 = arith.addf %55, %56 : vector<8x18xf32>
    %58 = arith.addf %47, %57 : vector<8x18xf32>
    %59 = vector.extract_strided_slice %46 {offsets = [0, 1], sizes = [32, 1], strides = [1, 1]} : vector<32x24xf32> to vector<32x1xf32>
    %60 = vector.broadcast %59 : vector<32x1xf32> to vector<32x18xf32>
    %61 = arith.mulf %44, %60 : vector<32x18xf32>
    %62 = vector.extract_strided_slice %61 {offsets = [0, 0], sizes = [8, 18], strides = [1, 1]} : vector<32x18xf32> to vector<8x18xf32>
    %63 = vector.extract_strided_slice %61 {offsets = [8, 0], sizes = [8, 18], strides = [1, 1]} : vector<32x18xf32> to vector<8x18xf32>
    %64 = arith.addf %62, %63 : vector<8x18xf32>
    %65 = vector.extract_strided_slice %61 {offsets = [16, 0], sizes = [8, 18], strides = [1, 1]} : vector<32x18xf32> to vector<8x18xf32>
    %66 = arith.addf %64, %65 : vector<8x18xf32>
    %67 = vector.extract_strided_slice %61 {offsets = [24, 0], sizes = [8, 18], strides = [1, 1]} : vector<32x18xf32> to vector<8x18xf32>
    %68 = arith.addf %66, %67 : vector<8x18xf32>
    %69 = arith.addf %58, %68 : vector<8x18xf32>
    %70 = vector.extract_strided_slice %46 {offsets = [0, 2], sizes = [32, 1], strides = [1, 1]} : vector<32x24xf32> to vector<32x1xf32>
    %71 = vector.broadcast %70 : vector<32x1xf32> to vector<32x18xf32>
    %72 = arith.mulf %45, %71 : vector<32x18xf32>
    %73 = vector.extract_strided_slice %72 {offsets = [0, 0], sizes = [8, 18], strides = [1, 1]} : vector<32x18xf32> to vector<8x18xf32>
    %74 = vector.extract_strided_slice %72 {offsets = [8, 0], sizes = [8, 18], strides = [1, 1]} : vector<32x18xf32> to vector<8x18xf32>
    %75 = arith.addf %73, %74 : vector<8x18xf32>
    %76 = vector.extract_strided_slice %72 {offsets = [16, 0], sizes = [8, 18], strides = [1, 1]} : vector<32x18xf32> to vector<8x18xf32>
    %77 = arith.addf %75, %76 : vector<8x18xf32>
    %78 = vector.extract_strided_slice %72 {offsets = [24, 0], sizes = [8, 18], strides = [1, 1]} : vector<32x18xf32> to vector<8x18xf32>
    %79 = arith.addf %77, %78 : vector<8x18xf32>
    %80 = arith.addf %69, %79 : vector<8x18xf32>
    %c0_20 = arith.constant 0 : index
    %81 = memref.load %arg5[%c0_20] : memref<8xf32, #tpu.memory_space<smem>>
    %82 = vector.broadcast %81 : f32 to vector<8x18xf32>
    %83 = arith.addf %80, %82 : vector<8x18xf32>
    %cst_21 = arith.constant 0.000000e+00 : f32
    %84 = vector.broadcast %cst_21 : f32 to vector<8x18xf32>
    %85 = arith.maximumf %83, %84 : vector<8x18xf32>
    %86 = vector.extract_strided_slice %85 {offsets = [0, 0], sizes = [8, 16], strides = [1, 1]} : vector<8x18xf32> to vector<8x16xf32>
    %87 = vector.extract_strided_slice %85 {offsets = [0, 1], sizes = [8, 16], strides = [1, 1]} : vector<8x18xf32> to vector<8x16xf32>
    %88 = arith.maximumf %86, %87 : vector<8x16xf32>
    %89 = vector.extract_strided_slice %85 {offsets = [0, 2], sizes = [8, 16], strides = [1, 1]} : vector<8x18xf32> to vector<8x16xf32>
    %90 = arith.maximumf %88, %89 : vector<8x16xf32>
    %c0_22 = arith.constant 0 : index
    %c0_23 = arith.constant 0 : index
    %91 = vector.load %arg14[%c0_22, %c0_23] : memref<8x128xf32, #tpu.memory_space<vmem>>, vector<8x16xf32>
    tpu.vector_store %arg14[%c0_22, %c0_23], %90 {strides = array<i32>} : memref<8x128xf32, #tpu.memory_space<vmem>>, vector<8x16xf32>,
    %cst_24 = arith.constant 0.000000e+00 : f32
    %92 = vector.broadcast %cst_24 : f32 to vector<8x18xf32>
    %93 = vector.extract_strided_slice %46 {offsets = [0, 3], sizes = [32, 1], strides = [1, 1]} : vector<32x24xf32> to vector<32x1xf32>
    %94 = vector.broadcast %93 : vector<32x1xf32> to vector<32x18xf32>
    %95 = arith.mulf %43, %94 : vector<32x18xf32>
    %96 = vector.extract_strided_slice %95 {offsets = [0, 0], sizes = [8, 18], strides = [1, 1]} : vector<32x18xf32> to vector<8x18xf32>
    %97 = vector.extract_strided_slice %95 {offsets = [8, 0], sizes = [8, 18], strides = [1, 1]} : vector<32x18xf32> to vector<8x18xf32>
    %98 = arith.addf %96, %97 : vector<8x18xf32>
    %99 = vector.extract_strided_slice %95 {offsets = [16, 0], sizes = [8, 18], strides = [1, 1]} : vector<32x18xf32> to vector<8x18xf32>
    %100 = arith.addf %98, %99 : vector<8x18xf32>
    %101 = vector.extract_strided_slice %95 {offsets = [24, 0], sizes = [8, 18], strides = [1, 1]} : vector<32x18xf32> to vector<8x18xf32>
    %102 = arith.addf %100, %101 : vector<8x18xf32>
    %103 = arith.addf %92, %102 : vector<8x18xf32>
    %104 = vector.extract_strided_slice %46 {offsets = [0, 4], sizes = [32, 1], strides = [1, 1]} : vector<32x24xf32> to vector<32x1xf32>
    %105 = vector.broadcast %104 : vector<32x1xf32> to vector<32x18xf32>
    %106 = arith.mulf %44, %105 : vector<32x18xf32>
    %107 = vector.extract_strided_slice %106 {offsets = [0, 0], sizes = [8, 18], strides = [1, 1]} : vector<32x18xf32> to vector<8x18xf32>
    %108 = vector.extract_strided_slice %106 {offsets = [8, 0], sizes = [8, 18], strides = [1, 1]} : vector<32x18xf32> to vector<8x18xf32>
    %109 = arith.addf %107, %108 : vector<8x18xf32>
    %110 = vector.extract_strided_slice %106 {offsets = [16, 0], sizes = [8, 18], strides = [1, 1]} : vector<32x18xf32> to vector<8x18xf32>
    %111 = arith.addf %109, %110 : vector<8x18xf32>
    %112 = vector.extract_strided_slice %106 {offsets = [24, 0], sizes = [8, 18], strides = [1, 1]} : vector<32x18xf32> to vector<8x18xf32>
    %113 = arith.addf %111, %112 : vector<8x18xf32>
    %114 = arith.addf %103, %113 : vector<8x18xf32>
    %115 = vector.extract_strided_slice %46 {offsets = [0, 5], sizes = [32, 1], strides = [1, 1]} : vector<32x24xf32> to vector<32x1xf32>
    %116 = vector.broadcast %115 : vector<32x1xf32> to vector<32x18xf32>
    %117 = arith.mulf %45, %116 : vector<32x18xf32>
    %118 = vector.extract_strided_slice %117 {offsets = [0, 0], sizes = [8, 18], strides = [1, 1]} : vector<32x18xf32> to vector<8x18xf32>
    %119 = vector.extract_strided_slice %117 {offsets = [8, 0], sizes = [8, 18], strides = [1, 1]} : vector<32x18xf32> to vector<8x18xf32>
    %120 = arith.addf %118, %119 : vector<8x18xf32>
    %121 = vector.extract_strided_slice %117 {offsets = [16, 0], sizes = [8, 18], strides = [1, 1]} : vector<32x18xf32> to vector<8x18xf32>
    %122 = arith.addf %120, %121 : vector<8x18xf32>
    %123 = vector.extract_strided_slice %117 {offsets = [24, 0], sizes = [8, 18], strides = [1, 1]} : vector<32x18xf32> to vector<8x18xf32>
    %124 = arith.addf %122, %123 : vector<8x18xf32>
    %125 = arith.addf %114, %124 : vector<8x18xf32>
    %c1 = arith.constant 1 : index
    %126 = memref.load %arg5[%c1] : memref<8xf32, #tpu.memory_space<smem>>
    %127 = vector.broadcast %126 : f32 to vector<8x18xf32>
    %128 = arith.addf %125, %127 : vector<8x18xf32>
    %cst_25 = arith.constant 0.000000e+00 : f32
    %129 = vector.broadcast %cst_25 : f32 to vector<8x18xf32>
    %130 = arith.maximumf %128, %129 : vector<8x18xf32>
    %131 = vector.extract_strided_slice %130 {offsets = [0, 0], sizes = [8, 16], strides = [1, 1]} : vector<8x18xf32> to vector<8x16xf32>
    %132 = vector.extract_strided_slice %130 {offsets = [0, 1], sizes = [8, 16], strides = [1, 1]} : vector<8x18xf32> to vector<8x16xf32>
    %133 = arith.maximumf %131, %132 : vector<8x16xf32>
    %134 = vector.extract_strided_slice %130 {offsets = [0, 2], sizes = [8, 16], strides = [1, 1]} : vector<8x18xf32> to vector<8x16xf32>
    %135 = arith.maximumf %133, %134 : vector<8x16xf32>
    %c0_26 = arith.constant 0 : index
    %c16_27 = arith.constant 16 : index
    %136 = vector.load %arg14[%c0_26, %c16_27] : memref<8x128xf32, #tpu.memory_space<vmem>>, vector<8x16xf32>
    tpu.vector_store %arg14[%c0_26, %c16_27], %135 {strides = array<i32>} : memref<8x128xf32, #tpu.memory_space<vmem>>, vector<8x16xf32>,
    %cst_28 = arith.constant 0.000000e+00 : f32
    %137 = vector.broadcast %cst_28 : f32 to vector<8x18xf32>
    %138 = vector.extract_strided_slice %46 {offsets = [0, 6], sizes = [32, 1], strides = [1, 1]} : vector<32x24xf32> to vector<32x1xf32>
    %139 = vector.broadcast %138 : vector<32x1xf32> to vector<32x18xf32>
    %140 = arith.mulf %43, %139 : vector<32x18xf32>
    %141 = vector.extract_strided_slice %140 {offsets = [0, 0], sizes = [8, 18], strides = [1, 1]} : vector<32x18xf32> to vector<8x18xf32>
    %142 = vector.extract_strided_slice %140 {offsets = [8, 0], sizes = [8, 18], strides = [1, 1]} : vector<32x18xf32> to vector<8x18xf32>
    %143 = arith.addf %141, %142 : vector<8x18xf32>
    %144 = vector.extract_strided_slice %140 {offsets = [16, 0], sizes = [8, 18], strides = [1, 1]} : vector<32x18xf32> to vector<8x18xf32>
    %145 = arith.addf %143, %144 : vector<8x18xf32>
    %146 = vector.extract_strided_slice %140 {offsets = [24, 0], sizes = [8, 18], strides = [1, 1]} : vector<32x18xf32> to vector<8x18xf32>
    %147 = arith.addf %145, %146 : vector<8x18xf32>
    %148 = arith.addf %137, %147 : vector<8x18xf32>
    %149 = vector.extract_strided_slice %46 {offsets = [0, 7], sizes = [32, 1], strides = [1, 1]} : vector<32x24xf32> to vector<32x1xf32>
    %150 = vector.broadcast %149 : vector<32x1xf32> to vector<32x18xf32>
    %151 = arith.mulf %44, %150 : vector<32x18xf32>
    %152 = vector.extract_strided_slice %151 {offsets = [0, 0], sizes = [8, 18], strides = [1, 1]} : vector<32x18xf32> to vector<8x18xf32>
    %153 = vector.extract_strided_slice %151 {offsets = [8, 0], sizes = [8, 18], strides = [1, 1]} : vector<32x18xf32> to vector<8x18xf32>
    %154 = arith.addf %152, %153 : vector<8x18xf32>
    %155 = vector.extract_strided_slice %151 {offsets = [16, 0], sizes = [8, 18], strides = [1, 1]} : vector<32x18xf32> to vector<8x18xf32>
    %156 = arith.addf %154, %155 : vector<8x18xf32>
    %157 = vector.extract_strided_slice %151 {offsets = [24, 0], sizes = [8, 18], strides = [1, 1]} : vector<32x18xf32> to vector<8x18xf32>
    %158 = arith.addf %156, %157 : vector<8x18xf32>
    %159 = arith.addf %148, %158 : vector<8x18xf32>
    %160 = vector.extract_strided_slice %46 {offsets = [0, 8], sizes = [32, 1], strides = [1, 1]} : vector<32x24xf32> to vector<32x1xf32>
    %161 = vector.broadcast %160 : vector<32x1xf32> to vector<32x18xf32>
    %162 = arith.mulf %45, %161 : vector<32x18xf32>
    %163 = vector.extract_strided_slice %162 {offsets = [0, 0], sizes = [8, 18], strides = [1, 1]} : vector<32x18xf32> to vector<8x18xf32>
    %164 = vector.extract_strided_slice %162 {offsets = [8, 0], sizes = [8, 18], strides = [1, 1]} : vector<32x18xf32> to vector<8x18xf32>
    %165 = arith.addf %163, %164 : vector<8x18xf32>
    %166 = vector.extract_strided_slice %162 {offsets = [16, 0], sizes = [8, 18], strides = [1, 1]} : vector<32x18xf32> to vector<8x18xf32>
    %167 = arith.addf %165, %166 : vector<8x18xf32>
    %168 = vector.extract_strided_slice %162 {offsets = [24, 0], sizes = [8, 18], strides = [1, 1]} : vector<32x18xf32> to vector<8x18xf32>
    %169 = arith.addf %167, %168 : vector<8x18xf32>
    %170 = arith.addf %159, %169 : vector<8x18xf32>
    %c2_29 = arith.constant 2 : index
    %171 = memref.load %arg5[%c2_29] : memref<8xf32, #tpu.memory_space<smem>>
    %172 = vector.broadcast %171 : f32 to vector<8x18xf32>
    %173 = arith.addf %170, %172 : vector<8x18xf32>
    %cst_30 = arith.constant 0.000000e+00 : f32
    %174 = vector.broadcast %cst_30 : f32 to vector<8x18xf32>
    %175 = arith.maximumf %173, %174 : vector<8x18xf32>
    %176 = vector.extract_strided_slice %175 {offsets = [0, 0], sizes = [8, 16], strides = [1, 1]} : vector<8x18xf32> to vector<8x16xf32>
    %177 = vector.extract_strided_slice %175 {offsets = [0, 1], sizes = [8, 16], strides = [1, 1]} : vector<8x18xf32> to vector<8x16xf32>
    %178 = arith.maximumf %176, %177 : vector<8x16xf32>
    %179 = vector.extract_strided_slice %175 {offsets = [0, 2], sizes = [8, 16], strides = [1, 1]} : vector<8x18xf32> to vector<8x16xf32>
    %180 = arith.maximumf %178, %179 : vector<8x16xf32>
    %c0_31 = arith.constant 0 : index
    %c32 = arith.constant 32 : index
    %181 = vector.load %arg14[%c0_31, %c32] : memref<8x128xf32, #tpu.memory_space<vmem>>, vector<8x16xf32>
    tpu.vector_store %arg14[%c0_31, %c32], %180 {strides = array<i32>} : memref<8x128xf32, #tpu.memory_space<vmem>>, vector<8x16xf32>,
    %cst_32 = arith.constant 0.000000e+00 : f32
    %182 = vector.broadcast %cst_32 : f32 to vector<8x18xf32>
    %183 = vector.extract_strided_slice %46 {offsets = [0, 9], sizes = [32, 1], strides = [1, 1]} : vector<32x24xf32> to vector<32x1xf32>
    %184 = vector.broadcast %183 : vector<32x1xf32> to vector<32x18xf32>
    %185 = arith.mulf %43, %184 : vector<32x18xf32>
    %186 = vector.extract_strided_slice %185 {offsets = [0, 0], sizes = [8, 18], strides = [1, 1]} : vector<32x18xf32> to vector<8x18xf32>
    %187 = vector.extract_strided_slice %185 {offsets = [8, 0], sizes = [8, 18], strides = [1, 1]} : vector<32x18xf32> to vector<8x18xf32>
    %188 = arith.addf %186, %187 : vector<8x18xf32>
    %189 = vector.extract_strided_slice %185 {offsets = [16, 0], sizes = [8, 18], strides = [1, 1]} : vector<32x18xf32> to vector<8x18xf32>
    %190 = arith.addf %188, %189 : vector<8x18xf32>
    %191 = vector.extract_strided_slice %185 {offsets = [24, 0], sizes = [8, 18], strides = [1, 1]} : vector<32x18xf32> to vector<8x18xf32>
    %192 = arith.addf %190, %191 : vector<8x18xf32>
    %193 = arith.addf %182, %192 : vector<8x18xf32>
    %194 = vector.extract_strided_slice %46 {offsets = [0, 10], sizes = [32, 1], strides = [1, 1]} : vector<32x24xf32> to vector<32x1xf32>
    %195 = vector.broadcast %194 : vector<32x1xf32> to vector<32x18xf32>
    %196 = arith.mulf %44, %195 : vector<32x18xf32>
    %197 = vector.extract_strided_slice %196 {offsets = [0, 0], sizes = [8, 18], strides = [1, 1]} : vector<32x18xf32> to vector<8x18xf32>
    %198 = vector.extract_strided_slice %196 {offsets = [8, 0], sizes = [8, 18], strides = [1, 1]} : vector<32x18xf32> to vector<8x18xf32>
    %199 = arith.addf %197, %198 : vector<8x18xf32>
    %200 = vector.extract_strided_slice %196 {offsets = [16, 0], sizes = [8, 18], strides = [1, 1]} : vector<32x18xf32> to vector<8x18xf32>
    %201 = arith.addf %199, %200 : vector<8x18xf32>
    %202 = vector.extract_strided_slice %196 {offsets = [24, 0], sizes = [8, 18], strides = [1, 1]} : vector<32x18xf32> to vector<8x18xf32>
    %203 = arith.addf %201, %202 : vector<8x18xf32>
    %204 = arith.addf %193, %203 : vector<8x18xf32>
    %205 = vector.extract_strided_slice %46 {offsets = [0, 11], sizes = [32, 1], strides = [1, 1]} : vector<32x24xf32> to vector<32x1xf32>
    %206 = vector.broadcast %205 : vector<32x1xf32> to vector<32x18xf32>
    %207 = arith.mulf %45, %206 : vector<32x18xf32>
    %208 = vector.extract_strided_slice %207 {offsets = [0, 0], sizes = [8, 18], strides = [1, 1]} : vector<32x18xf32> to vector<8x18xf32>
    %209 = vector.extract_strided_slice %207 {offsets = [8, 0], sizes = [8, 18], strides = [1, 1]} : vector<32x18xf32> to vector<8x18xf32>
    %210 = arith.addf %208, %209 : vector<8x18xf32>
    %211 = vector.extract_strided_slice %207 {offsets = [16, 0], sizes = [8, 18], strides = [1, 1]} : vector<32x18xf32> to vector<8x18xf32>
    %212 = arith.addf %210, %211 : vector<8x18xf32>
    %213 = vector.extract_strided_slice %207 {offsets = [24, 0], sizes = [8, 18], strides = [1, 1]} : vector<32x18xf32> to vector<8x18xf32>
    %214 = arith.addf %212, %213 : vector<8x18xf32>
    %215 = arith.addf %204, %214 : vector<8x18xf32>
    %c3 = arith.constant 3 : index
    %216 = memref.load %arg5[%c3] : memref<8xf32, #tpu.memory_space<smem>>
    %217 = vector.broadcast %216 : f32 to vector<8x18xf32>
    %218 = arith.addf %215, %217 : vector<8x18xf32>
    %cst_33 = arith.constant 0.000000e+00 : f32
    %219 = vector.broadcast %cst_33 : f32 to vector<8x18xf32>
    %220 = arith.maximumf %218, %219 : vector<8x18xf32>
    %221 = vector.extract_strided_slice %220 {offsets = [0, 0], sizes = [8, 16], strides = [1, 1]} : vector<8x18xf32> to vector<8x16xf32>
    %222 = vector.extract_strided_slice %220 {offsets = [0, 1], sizes = [8, 16], strides = [1, 1]} : vector<8x18xf32> to vector<8x16xf32>
    %223 = arith.maximumf %221, %222 : vector<8x16xf32>
    %224 = vector.extract_strided_slice %220 {offsets = [0, 2], sizes = [8, 16], strides = [1, 1]} : vector<8x18xf32> to vector<8x16xf32>
    %225 = arith.maximumf %223, %224 : vector<8x16xf32>
    %c0_34 = arith.constant 0 : index
    %c48 = arith.constant 48 : index
    %226 = vector.load %arg14[%c0_34, %c48] : memref<8x128xf32, #tpu.memory_space<vmem>>, vector<8x16xf32>
    tpu.vector_store %arg14[%c0_34, %c48], %225 {strides = array<i32>} : memref<8x128xf32, #tpu.memory_space<vmem>>, vector<8x16xf32>,
    %cst_35 = arith.constant 0.000000e+00 : f32
    %227 = vector.broadcast %cst_35 : f32 to vector<8x18xf32>
    %228 = vector.extract_strided_slice %46 {offsets = [0, 12], sizes = [32, 1], strides = [1, 1]} : vector<32x24xf32> to vector<32x1xf32>
    %229 = vector.broadcast %228 : vector<32x1xf32> to vector<32x18xf32>
    %230 = arith.mulf %43, %229 : vector<32x18xf32>
    %231 = vector.extract_strided_slice %230 {offsets = [0, 0], sizes = [8, 18], strides = [1, 1]} : vector<32x18xf32> to vector<8x18xf32>
    %232 = vector.extract_strided_slice %230 {offsets = [8, 0], sizes = [8, 18], strides = [1, 1]} : vector<32x18xf32> to vector<8x18xf32>
    %233 = arith.addf %231, %232 : vector<8x18xf32>
    %234 = vector.extract_strided_slice %230 {offsets = [16, 0], sizes = [8, 18], strides = [1, 1]} : vector<32x18xf32> to vector<8x18xf32>
    %235 = arith.addf %233, %234 : vector<8x18xf32>
    %236 = vector.extract_strided_slice %230 {offsets = [24, 0], sizes = [8, 18], strides = [1, 1]} : vector<32x18xf32> to vector<8x18xf32>
    %237 = arith.addf %235, %236 : vector<8x18xf32>
    %238 = arith.addf %227, %237 : vector<8x18xf32>
    %239 = vector.extract_strided_slice %46 {offsets = [0, 13], sizes = [32, 1], strides = [1, 1]} : vector<32x24xf32> to vector<32x1xf32>
    %240 = vector.broadcast %239 : vector<32x1xf32> to vector<32x18xf32>
    %241 = arith.mulf %44, %240 : vector<32x18xf32>
    %242 = vector.extract_strided_slice %241 {offsets = [0, 0], sizes = [8, 18], strides = [1, 1]} : vector<32x18xf32> to vector<8x18xf32>
    %243 = vector.extract_strided_slice %241 {offsets = [8, 0], sizes = [8, 18], strides = [1, 1]} : vector<32x18xf32> to vector<8x18xf32>
    %244 = arith.addf %242, %243 : vector<8x18xf32>
    %245 = vector.extract_strided_slice %241 {offsets = [16, 0], sizes = [8, 18], strides = [1, 1]} : vector<32x18xf32> to vector<8x18xf32>
    %246 = arith.addf %244, %245 : vector<8x18xf32>
    %247 = vector.extract_strided_slice %241 {offsets = [24, 0], sizes = [8, 18], strides = [1, 1]} : vector<32x18xf32> to vector<8x18xf32>
    %248 = arith.addf %246, %247 : vector<8x18xf32>
    %249 = arith.addf %238, %248 : vector<8x18xf32>
    %250 = vector.extract_strided_slice %46 {offsets = [0, 14], sizes = [32, 1], strides = [1, 1]} : vector<32x24xf32> to vector<32x1xf32>
    %251 = vector.broadcast %250 : vector<32x1xf32> to vector<32x18xf32>
    %252 = arith.mulf %45, %251 : vector<32x18xf32>
    %253 = vector.extract_strided_slice %252 {offsets = [0, 0], sizes = [8, 18], strides = [1, 1]} : vector<32x18xf32> to vector<8x18xf32>
    %254 = vector.extract_strided_slice %252 {offsets = [8, 0], sizes = [8, 18], strides = [1, 1]} : vector<32x18xf32> to vector<8x18xf32>
    %255 = arith.addf %253, %254 : vector<8x18xf32>
    %256 = vector.extract_strided_slice %252 {offsets = [16, 0], sizes = [8, 18], strides = [1, 1]} : vector<32x18xf32> to vector<8x18xf32>
    %257 = arith.addf %255, %256 : vector<8x18xf32>
    %258 = vector.extract_strided_slice %252 {offsets = [24, 0], sizes = [8, 18], strides = [1, 1]} : vector<32x18xf32> to vector<8x18xf32>
    %259 = arith.addf %257, %258 : vector<8x18xf32>
    %260 = arith.addf %249, %259 : vector<8x18xf32>
    %c4 = arith.constant 4 : index
    %261 = memref.load %arg5[%c4] : memref<8xf32, #tpu.memory_space<smem>>
    %262 = vector.broadcast %261 : f32 to vector<8x18xf32>
    %263 = arith.addf %260, %262 : vector<8x18xf32>
    %cst_36 = arith.constant 0.000000e+00 : f32
    %264 = vector.broadcast %cst_36 : f32 to vector<8x18xf32>
    %265 = arith.maximumf %263, %264 : vector<8x18xf32>
    %266 = vector.extract_strided_slice %265 {offsets = [0, 0], sizes = [8, 16], strides = [1, 1]} : vector<8x18xf32> to vector<8x16xf32>
    %267 = vector.extract_strided_slice %265 {offsets = [0, 1], sizes = [8, 16], strides = [1, 1]} : vector<8x18xf32> to vector<8x16xf32>
    %268 = arith.maximumf %266, %267 : vector<8x16xf32>
    %269 = vector.extract_strided_slice %265 {offsets = [0, 2], sizes = [8, 16], strides = [1, 1]} : vector<8x18xf32> to vector<8x16xf32>
    %270 = arith.maximumf %268, %269 : vector<8x16xf32>
    %c0_37 = arith.constant 0 : index
    %c64 = arith.constant 64 : index
    %271 = vector.load %arg14[%c0_37, %c64] : memref<8x128xf32, #tpu.memory_space<vmem>>, vector<8x16xf32>
    tpu.vector_store %arg14[%c0_37, %c64], %270 {strides = array<i32>} : memref<8x128xf32, #tpu.memory_space<vmem>>, vector<8x16xf32>,
    %cst_38 = arith.constant 0.000000e+00 : f32
    %272 = vector.broadcast %cst_38 : f32 to vector<8x18xf32>
    %273 = vector.extract_strided_slice %46 {offsets = [0, 15], sizes = [32, 1], strides = [1, 1]} : vector<32x24xf32> to vector<32x1xf32>
    %274 = vector.broadcast %273 : vector<32x1xf32> to vector<32x18xf32>
    %275 = arith.mulf %43, %274 : vector<32x18xf32>
    %276 = vector.extract_strided_slice %275 {offsets = [0, 0], sizes = [8, 18], strides = [1, 1]} : vector<32x18xf32> to vector<8x18xf32>
    %277 = vector.extract_strided_slice %275 {offsets = [8, 0], sizes = [8, 18], strides = [1, 1]} : vector<32x18xf32> to vector<8x18xf32>
    %278 = arith.addf %276, %277 : vector<8x18xf32>
    %279 = vector.extract_strided_slice %275 {offsets = [16, 0], sizes = [8, 18], strides = [1, 1]} : vector<32x18xf32> to vector<8x18xf32>
    %280 = arith.addf %278, %279 : vector<8x18xf32>
    %281 = vector.extract_strided_slice %275 {offsets = [24, 0], sizes = [8, 18], strides = [1, 1]} : vector<32x18xf32> to vector<8x18xf32>
    %282 = arith.addf %280, %281 : vector<8x18xf32>
    %283 = arith.addf %272, %282 : vector<8x18xf32>
    %284 = vector.extract_strided_slice %46 {offsets = [0, 16], sizes = [32, 1], strides = [1, 1]} : vector<32x24xf32> to vector<32x1xf32>
    %285 = vector.broadcast %284 : vector<32x1xf32> to vector<32x18xf32>
    %286 = arith.mulf %44, %285 : vector<32x18xf32>
    %287 = vector.extract_strided_slice %286 {offsets = [0, 0], sizes = [8, 18], strides = [1, 1]} : vector<32x18xf32> to vector<8x18xf32>
    %288 = vector.extract_strided_slice %286 {offsets = [8, 0], sizes = [8, 18], strides = [1, 1]} : vector<32x18xf32> to vector<8x18xf32>
    %289 = arith.addf %287, %288 : vector<8x18xf32>
    %290 = vector.extract_strided_slice %286 {offsets = [16, 0], sizes = [8, 18], strides = [1, 1]} : vector<32x18xf32> to vector<8x18xf32>
    %291 = arith.addf %289, %290 : vector<8x18xf32>
    %292 = vector.extract_strided_slice %286 {offsets = [24, 0], sizes = [8, 18], strides = [1, 1]} : vector<32x18xf32> to vector<8x18xf32>
    %293 = arith.addf %291, %292 : vector<8x18xf32>
    %294 = arith.addf %283, %293 : vector<8x18xf32>
    %295 = vector.extract_strided_slice %46 {offsets = [0, 17], sizes = [32, 1], strides = [1, 1]} : vector<32x24xf32> to vector<32x1xf32>
    %296 = vector.broadcast %295 : vector<32x1xf32> to vector<32x18xf32>
    %297 = arith.mulf %45, %296 : vector<32x18xf32>
    %298 = vector.extract_strided_slice %297 {offsets = [0, 0], sizes = [8, 18], strides = [1, 1]} : vector<32x18xf32> to vector<8x18xf32>
    %299 = vector.extract_strided_slice %297 {offsets = [8, 0], sizes = [8, 18], strides = [1, 1]} : vector<32x18xf32> to vector<8x18xf32>
    %300 = arith.addf %298, %299 : vector<8x18xf32>
    %301 = vector.extract_strided_slice %297 {offsets = [16, 0], sizes = [8, 18], strides = [1, 1]} : vector<32x18xf32> to vector<8x18xf32>
    %302 = arith.addf %300, %301 : vector<8x18xf32>
    %303 = vector.extract_strided_slice %297 {offsets = [24, 0], sizes = [8, 18], strides = [1, 1]} : vector<32x18xf32> to vector<8x18xf32>
    %304 = arith.addf %302, %303 : vector<8x18xf32>
    %305 = arith.addf %294, %304 : vector<8x18xf32>
    %c5 = arith.constant 5 : index
    %306 = memref.load %arg5[%c5] : memref<8xf32, #tpu.memory_space<smem>>
    %307 = vector.broadcast %306 : f32 to vector<8x18xf32>
    %308 = arith.addf %305, %307 : vector<8x18xf32>
    %cst_39 = arith.constant 0.000000e+00 : f32
    %309 = vector.broadcast %cst_39 : f32 to vector<8x18xf32>
    %310 = arith.maximumf %308, %309 : vector<8x18xf32>
    %311 = vector.extract_strided_slice %310 {offsets = [0, 0], sizes = [8, 16], strides = [1, 1]} : vector<8x18xf32> to vector<8x16xf32>
    %312 = vector.extract_strided_slice %310 {offsets = [0, 1], sizes = [8, 16], strides = [1, 1]} : vector<8x18xf32> to vector<8x16xf32>
    %313 = arith.maximumf %311, %312 : vector<8x16xf32>
    %314 = vector.extract_strided_slice %310 {offsets = [0, 2], sizes = [8, 16], strides = [1, 1]} : vector<8x18xf32> to vector<8x16xf32>
    %315 = arith.maximumf %313, %314 : vector<8x16xf32>
    %c0_40 = arith.constant 0 : index
    %c80 = arith.constant 80 : index
    %316 = vector.load %arg14[%c0_40, %c80] : memref<8x128xf32, #tpu.memory_space<vmem>>, vector<8x16xf32>
    tpu.vector_store %arg14[%c0_40, %c80], %315 {strides = array<i32>} : memref<8x128xf32, #tpu.memory_space<vmem>>, vector<8x16xf32>,
    %cst_41 = arith.constant 0.000000e+00 : f32
    %317 = vector.broadcast %cst_41 : f32 to vector<8x18xf32>
    %318 = vector.extract_strided_slice %46 {offsets = [0, 18], sizes = [32, 1], strides = [1, 1]} : vector<32x24xf32> to vector<32x1xf32>
    %319 = vector.broadcast %318 : vector<32x1xf32> to vector<32x18xf32>
    %320 = arith.mulf %43, %319 : vector<32x18xf32>
    %321 = vector.extract_strided_slice %320 {offsets = [0, 0], sizes = [8, 18], strides = [1, 1]} : vector<32x18xf32> to vector<8x18xf32>
    %322 = vector.extract_strided_slice %320 {offsets = [8, 0], sizes = [8, 18], strides = [1, 1]} : vector<32x18xf32> to vector<8x18xf32>
    %323 = arith.addf %321, %322 : vector<8x18xf32>
    %324 = vector.extract_strided_slice %320 {offsets = [16, 0], sizes = [8, 18], strides = [1, 1]} : vector<32x18xf32> to vector<8x18xf32>
    %325 = arith.addf %323, %324 : vector<8x18xf32>
    %326 = vector.extract_strided_slice %320 {offsets = [24, 0], sizes = [8, 18], strides = [1, 1]} : vector<32x18xf32> to vector<8x18xf32>
    %327 = arith.addf %325, %326 : vector<8x18xf32>
    %328 = arith.addf %317, %327 : vector<8x18xf32>
    %329 = vector.extract_strided_slice %46 {offsets = [0, 19], sizes = [32, 1], strides = [1, 1]} : vector<32x24xf32> to vector<32x1xf32>
    %330 = vector.broadcast %329 : vector<32x1xf32> to vector<32x18xf32>
    %331 = arith.mulf %44, %330 : vector<32x18xf32>
    %332 = vector.extract_strided_slice %331 {offsets = [0, 0], sizes = [8, 18], strides = [1, 1]} : vector<32x18xf32> to vector<8x18xf32>
    %333 = vector.extract_strided_slice %331 {offsets = [8, 0], sizes = [8, 18], strides = [1, 1]} : vector<32x18xf32> to vector<8x18xf32>
    %334 = arith.addf %332, %333 : vector<8x18xf32>
    %335 = vector.extract_strided_slice %331 {offsets = [16, 0], sizes = [8, 18], strides = [1, 1]} : vector<32x18xf32> to vector<8x18xf32>
    %336 = arith.addf %334, %335 : vector<8x18xf32>
    %337 = vector.extract_strided_slice %331 {offsets = [24, 0], sizes = [8, 18], strides = [1, 1]} : vector<32x18xf32> to vector<8x18xf32>
    %338 = arith.addf %336, %337 : vector<8x18xf32>
    %339 = arith.addf %328, %338 : vector<8x18xf32>
    %340 = vector.extract_strided_slice %46 {offsets = [0, 20], sizes = [32, 1], strides = [1, 1]} : vector<32x24xf32> to vector<32x1xf32>
    %341 = vector.broadcast %340 : vector<32x1xf32> to vector<32x18xf32>
    %342 = arith.mulf %45, %341 : vector<32x18xf32>
    %343 = vector.extract_strided_slice %342 {offsets = [0, 0], sizes = [8, 18], strides = [1, 1]} : vector<32x18xf32> to vector<8x18xf32>
    %344 = vector.extract_strided_slice %342 {offsets = [8, 0], sizes = [8, 18], strides = [1, 1]} : vector<32x18xf32> to vector<8x18xf32>
    %345 = arith.addf %343, %344 : vector<8x18xf32>
    %346 = vector.extract_strided_slice %342 {offsets = [16, 0], sizes = [8, 18], strides = [1, 1]} : vector<32x18xf32> to vector<8x18xf32>
    %347 = arith.addf %345, %346 : vector<8x18xf32>
    %348 = vector.extract_strided_slice %342 {offsets = [24, 0], sizes = [8, 18], strides = [1, 1]} : vector<32x18xf32> to vector<8x18xf32>
    %349 = arith.addf %347, %348 : vector<8x18xf32>
    %350 = arith.addf %339, %349 : vector<8x18xf32>
    %c6 = arith.constant 6 : index
    %351 = memref.load %arg5[%c6] : memref<8xf32, #tpu.memory_space<smem>>
    %352 = vector.broadcast %351 : f32 to vector<8x18xf32>
    %353 = arith.addf %350, %352 : vector<8x18xf32>
    %cst_42 = arith.constant 0.000000e+00 : f32
    %354 = vector.broadcast %cst_42 : f32 to vector<8x18xf32>
    %355 = arith.maximumf %353, %354 : vector<8x18xf32>
    %356 = vector.extract_strided_slice %355 {offsets = [0, 0], sizes = [8, 16], strides = [1, 1]} : vector<8x18xf32> to vector<8x16xf32>
    %357 = vector.extract_strided_slice %355 {offsets = [0, 1], sizes = [8, 16], strides = [1, 1]} : vector<8x18xf32> to vector<8x16xf32>
    %358 = arith.maximumf %356, %357 : vector<8x16xf32>
    %359 = vector.extract_strided_slice %355 {offsets = [0, 2], sizes = [8, 16], strides = [1, 1]} : vector<8x18xf32> to vector<8x16xf32>
    %360 = arith.maximumf %358, %359 : vector<8x16xf32>
    %c0_43 = arith.constant 0 : index
    %c96 = arith.constant 96 : index
    %361 = vector.load %arg14[%c0_43, %c96] : memref<8x128xf32, #tpu.memory_space<vmem>>, vector<8x16xf32>
    tpu.vector_store %arg14[%c0_43, %c96], %360 {strides = array<i32>} : memref<8x128xf32, #tpu.memory_space<vmem>>, vector<8x16xf32>,
    %cst_44 = arith.constant 0.000000e+00 : f32
    %362 = vector.broadcast %cst_44 : f32 to vector<8x18xf32>
    %363 = vector.extract_strided_slice %46 {offsets = [0, 21], sizes = [32, 1], strides = [1, 1]} : vector<32x24xf32> to vector<32x1xf32>
    %364 = vector.broadcast %363 : vector<32x1xf32> to vector<32x18xf32>
    %365 = arith.mulf %43, %364 : vector<32x18xf32>
    %366 = vector.extract_strided_slice %365 {offsets = [0, 0], sizes = [8, 18], strides = [1, 1]} : vector<32x18xf32> to vector<8x18xf32>
    %367 = vector.extract_strided_slice %365 {offsets = [8, 0], sizes = [8, 18], strides = [1, 1]} : vector<32x18xf32> to vector<8x18xf32>
    %368 = arith.addf %366, %367 : vector<8x18xf32>
    %369 = vector.extract_strided_slice %365 {offsets = [16, 0], sizes = [8, 18], strides = [1, 1]} : vector<32x18xf32> to vector<8x18xf32>
    %370 = arith.addf %368, %369 : vector<8x18xf32>
    %371 = vector.extract_strided_slice %365 {offsets = [24, 0], sizes = [8, 18], strides = [1, 1]} : vector<32x18xf32> to vector<8x18xf32>
    %372 = arith.addf %370, %371 : vector<8x18xf32>
    %373 = arith.addf %362, %372 : vector<8x18xf32>
    %374 = vector.extract_strided_slice %46 {offsets = [0, 22], sizes = [32, 1], strides = [1, 1]} : vector<32x24xf32> to vector<32x1xf32>
    %375 = vector.broadcast %374 : vector<32x1xf32> to vector<32x18xf32>
    %376 = arith.mulf %44, %375 : vector<32x18xf32>
    %377 = vector.extract_strided_slice %376 {offsets = [0, 0], sizes = [8, 18], strides = [1, 1]} : vector<32x18xf32> to vector<8x18xf32>
    %378 = vector.extract_strided_slice %376 {offsets = [8, 0], sizes = [8, 18], strides = [1, 1]} : vector<32x18xf32> to vector<8x18xf32>
    %379 = arith.addf %377, %378 : vector<8x18xf32>
    %380 = vector.extract_strided_slice %376 {offsets = [16, 0], sizes = [8, 18], strides = [1, 1]} : vector<32x18xf32> to vector<8x18xf32>
    %381 = arith.addf %379, %380 : vector<8x18xf32>
    %382 = vector.extract_strided_slice %376 {offsets = [24, 0], sizes = [8, 18], strides = [1, 1]} : vector<32x18xf32> to vector<8x18xf32>
    %383 = arith.addf %381, %382 : vector<8x18xf32>
    %384 = arith.addf %373, %383 : vector<8x18xf32>
    %385 = vector.extract_strided_slice %46 {offsets = [0, 23], sizes = [32, 1], strides = [1, 1]} : vector<32x24xf32> to vector<32x1xf32>
    %386 = vector.broadcast %385 : vector<32x1xf32> to vector<32x18xf32>
    %387 = arith.mulf %45, %386 : vector<32x18xf32>
    %388 = vector.extract_strided_slice %387 {offsets = [0, 0], sizes = [8, 18], strides = [1, 1]} : vector<32x18xf32> to vector<8x18xf32>
    %389 = vector.extract_strided_slice %387 {offsets = [8, 0], sizes = [8, 18], strides = [1, 1]} : vector<32x18xf32> to vector<8x18xf32>
    %390 = arith.addf %388, %389 : vector<8x18xf32>
    %391 = vector.extract_strided_slice %387 {offsets = [16, 0], sizes = [8, 18], strides = [1, 1]} : vector<32x18xf32> to vector<8x18xf32>
    %392 = arith.addf %390, %391 : vector<8x18xf32>
    %393 = vector.extract_strided_slice %387 {offsets = [24, 0], sizes = [8, 18], strides = [1, 1]} : vector<32x18xf32> to vector<8x18xf32>
    %394 = arith.addf %392, %393 : vector<8x18xf32>
    %395 = arith.addf %384, %394 : vector<8x18xf32>
    %c7 = arith.constant 7 : index
    %396 = memref.load %arg5[%c7] : memref<8xf32, #tpu.memory_space<smem>>
    %397 = vector.broadcast %396 : f32 to vector<8x18xf32>
    %398 = arith.addf %395, %397 : vector<8x18xf32>
    %cst_45 = arith.constant 0.000000e+00 : f32
    %399 = vector.broadcast %cst_45 : f32 to vector<8x18xf32>
    %400 = arith.maximumf %398, %399 : vector<8x18xf32>
    %401 = vector.extract_strided_slice %400 {offsets = [0, 0], sizes = [8, 16], strides = [1, 1]} : vector<8x18xf32> to vector<8x16xf32>
    %402 = vector.extract_strided_slice %400 {offsets = [0, 1], sizes = [8, 16], strides = [1, 1]} : vector<8x18xf32> to vector<8x16xf32>
    %403 = arith.maximumf %401, %402 : vector<8x16xf32>
    %404 = vector.extract_strided_slice %400 {offsets = [0, 2], sizes = [8, 16], strides = [1, 1]} : vector<8x18xf32> to vector<8x16xf32>
    %405 = arith.maximumf %403, %404 : vector<8x16xf32>
    %c0_46 = arith.constant 0 : index
    %c112 = arith.constant 112 : index
    %406 = vector.load %arg14[%c0_46, %c112] : memref<8x128xf32, #tpu.memory_space<vmem>>, vector<8x16xf32>
    tpu.vector_store %arg14[%c0_46, %c112], %405 {strides = array<i32>} : memref<8x128xf32, #tpu.memory_space<vmem>>, vector<8x16xf32>,
    %c0_47 = arith.constant 0 : index
    %c0_48 = arith.constant 0 : index
    %407 = vector.load %arg14[%c0_47, %c0_48] : memref<8x128xf32, #tpu.memory_space<vmem>>, vector<8x128xf32>
    %c0_49 = arith.constant 0 : index
    %c0_50 = arith.constant 0 : index
    %408 = vector.load %arg6[%c0_49, %c0_50] : memref<128x32xf32, #tpu.memory_space<vmem>>, vector<128x32xf32>
    %cst_51 = arith.constant dense<0.000000e+00> : vector<8x32xf32>
    %409 = tpu.matmul %407, %408, %cst_51 {dimension_numbers = #tpu.dot_dimension_numbers<[1], [0], [0], [1], [0, 0, 1, 1], [], []>, precision = #tpu.contract_precision<fp32>} : vector<8x128xf32>, vector<128x32xf32>, vector<8x32xf32> -> vector<8x32xf32>
    %c0_52 = arith.constant 0 : index
    %c0_53 = arith.constant 0 : index
    %410 = vector.load %arg7[%c0_52, %c0_53] : memref<1x32xf32, #tpu.memory_space<vmem>>, vector<1x32xf32>
    %411 = vector.broadcast %410 : vector<1x32xf32> to vector<8x32xf32>
    %412 = arith.addf %409, %411 : vector<8x32xf32>
    %cst_54 = arith.constant 0.000000e+00 : f32
    %413 = vector.broadcast %cst_54 : f32 to vector<8x32xf32>
    %414 = arith.maximumf %412, %413 : vector<8x32xf32>
    %c0_55 = arith.constant 0 : index
    %c0_56 = arith.constant 0 : index
    %415 = vector.load %arg8[%c0_55, %c0_56] : memref<32x16xf32, #tpu.memory_space<vmem>>, vector<32x16xf32>
    %cst_57 = arith.constant dense<0.000000e+00> : vector<8x16xf32>
    %416 = tpu.matmul %414, %415, %cst_57 {dimension_numbers = #tpu.dot_dimension_numbers<[1], [0], [0], [1], [0, 0, 1, 1], [], []>, precision = #tpu.contract_precision<fp32>} : vector<8x32xf32>, vector<32x16xf32>, vector<8x16xf32> -> vector<8x16xf32>
    %c0_58 = arith.constant 0 : index
    %c0_59 = arith.constant 0 : index
    %417 = vector.load %arg9[%c0_58, %c0_59] : memref<1x16xf32, #tpu.memory_space<vmem>>, vector<1x16xf32>
    %418 = vector.broadcast %417 : vector<1x16xf32> to vector<8x16xf32>
    %419 = arith.addf %416, %418 : vector<8x16xf32>
    %cst_60 = arith.constant 0.000000e+00 : f32
    %420 = vector.broadcast %cst_60 : f32 to vector<8x16xf32>
    %421 = arith.maximumf %419, %420 : vector<8x16xf32>
    %c0_61 = arith.constant 0 : index
    %c0_62 = arith.constant 0 : index
    %422 = vector.load %arg10[%c0_61, %c0_62] : memref<16x128xf32, #tpu.memory_space<vmem>>, vector<16x128xf32>
    %cst_63 = arith.constant dense<0.000000e+00> : vector<8x128xf32>
    %423 = tpu.matmul %421, %422, %cst_63 {dimension_numbers = #tpu.dot_dimension_numbers<[1], [0], [0], [1], [0, 0, 1, 1], [], []>, precision = #tpu.contract_precision<fp32>} : vector<8x16xf32>, vector<16x128xf32>, vector<8x128xf32> -> vector<8x128xf32>
    %c0_64 = arith.constant 0 : index
    %c0_65 = arith.constant 0 : index
    %424 = vector.load %arg11[%c0_64, %c0_65] : memref<1x128xf32, #tpu.memory_space<vmem>>, vector<1x128xf32>
    %425 = vector.broadcast %424 : vector<1x128xf32> to vector<8x128xf32>
    %426 = arith.addf %423, %425 : vector<8x128xf32>
    %c0_66 = arith.constant 0 : index
    %c0_67 = arith.constant 0 : index
    %427 = vector.load %arg12[%c0_66, %c0_67] : memref<8x128xf32, #tpu.memory_space<vmem>>, vector<8x128xf32>
    tpu.vector_store %arg12[%c0_66, %c0_67], %426 {strides = array<i32>} : memref<8x128xf32, #tpu.memory_space<vmem>>, vector<8x128xf32>,
    return
  }
  func.func @transform_0(%arg0: i32) -> (i32, i32) {
    %c0_i32 = arith.constant 0 : i32
    %c0_i32_0 = arith.constant 0 : i32
    return %arg0, %c0_i32 : i32, i32
  }
  func.func @transform_1(%arg0: i32) -> (i32, i32) {
    %c0_i32 = arith.constant 0 : i32
    %c0_i32_0 = arith.constant 0 : i32
    %c0_i32_1 = arith.constant 0 : i32
    return %c0_i32, %c0_i32_0 : i32, i32
  }
  func.func @transform_2(%arg0: i32) -> (i32, i32) {
    %c0_i32 = arith.constant 0 : i32
    %c0_i32_0 = arith.constant 0 : i32
    %c0_i32_1 = arith.constant 0 : i32
    return %c0_i32, %c0_i32_0 : i32, i32
  }
  func.func @transform_3(%arg0: i32) -> (i32, i32) {
    %c0_i32 = arith.constant 0 : i32
    %c0_i32_0 = arith.constant 0 : i32
    %c0_i32_1 = arith.constant 0 : i32
    return %c0_i32, %c0_i32_0 : i32, i32
  }
  func.func @transform_4(%arg0: i32) -> i32 {
    %c0_i32 = arith.constant 0 : i32
    %c0_i32_0 = arith.constant 0 : i32
    return %c0_i32 : i32
  }
  func.func @transform_5(%arg0: i32) -> (i32, i32) {
    %c0_i32 = arith.constant 0 : i32
    %c0_i32_0 = arith.constant 0 : i32
    %c0_i32_1 = arith.constant 0 : i32
    return %c0_i32, %c0_i32_0 : i32, i32
  }
  func.func @transform_6(%arg0: i32) -> (i32, i32) {
    %c0_i32 = arith.constant 0 : i32
    %c0_i32_0 = arith.constant 0 : i32
    %c0_i32_1 = arith.constant 0 : i32
    return %c0_i32, %c0_i32_0 : i32, i32
  }
  func.func @transform_7(%arg0: i32) -> (i32, i32) {
    %c0_i32 = arith.constant 0 : i32
    %c0_i32_0 = arith.constant 0 : i32
    %c0_i32_1 = arith.constant 0 : i32
    return %c0_i32, %c0_i32_0 : i32, i32
  }
  func.func @transform_8(%arg0: i32) -> (i32, i32) {
    %c0_i32 = arith.constant 0 : i32
    %c0_i32_0 = arith.constant 0 : i32
    %c0_i32_1 = arith.constant 0 : i32
    return %c0_i32, %c0_i32_0 : i32, i32
  }
  func.func @transform_9(%arg0: i32) -> (i32, i32) {
    %c0_i32 = arith.constant 0 : i32
    %c0_i32_0 = arith.constant 0 : i32
    %c0_i32_1 = arith.constant 0 : i32
    return %c0_i32, %c0_i32_0 : i32, i32
  }
  func.func @transform_10(%arg0: i32) -> (i32, i32) {
    %c0_i32 = arith.constant 0 : i32
    %c0_i32_0 = arith.constant 0 : i32
    %c0_i32_1 = arith.constant 0 : i32
    return %c0_i32, %c0_i32_0 : i32, i32
  }
  func.func @transform_11(%arg0: i32) -> (i32, i32) {
    %c0_i32 = arith.constant 0 : i32
    %c0_i32_0 = arith.constant 0 : i32
    return %arg0, %c0_i32 : i32, i32
  }
}

</mosaic_0001>

<bundles_post_ra>
// kernel: conv_model_forward.1
= control target key start
LH: loop header
LB: loop body
LE: loop exit
PB: predicated region body
PF: predicated region fallthrough
CT: control target
= control target key end

     0   :  { %16 = vsyncpa [#allocation5], 0  ;;  %s4715_s0 = inlined_call_operand.vmem [shape: f32[8,20], index: 0, kind: input, shape index: {}]   ;;  %s4716_s1 = inlined_call_operand.vmem [shape: f32[32,3], index: 1, kind: input, shape index: {}]   ;;  %s4717_s2 = inlined_call_operand.vmem [shape: f32[32,1], index: 2, kind: input, shape index: {}]   ;;  %s4718_s3 = inlined_call_operand.vmem [shape: f32[32,24], index: 3, kind: input, shape index: {}]   ;;  %s4719_s4 = inlined_call_operand.vmem [shape: f32[8], index: 4, kind: input, shape index: {}]   ;;  %s4720_s5 = inlined_call_operand.vmem [shape: f32[128,32], index: 5, kind: input, shape index: {}]   ;;  %s4721_s6 = inlined_call_operand.vmem [shape: f32[1,32], index: 6, kind: input, shape index: {}]   ;;  %s4722_s7 = inlined_call_operand.vmem [shape: f32[32,16], index: 7, kind: input, shape index: {}]   ;;  %s4723_s8 = inlined_call_operand.vmem [shape: f32[1,16], index: 8, kind: input, shape index: {}]   ;;  %s4724_s9 = inlined_call_operand.vmem [shape: f32[16,128], index: 9, kind: input, shape index: {}]   ;;  %s4725_s10 = inlined_call_operand.vmem [shape: f32[1,128], index: 10, kind: input, shape index: {}]   ;;  %s4726_s11 = inlined_call_operand.vmem [shape: f32[8,128], index: 11, kind: output, shape index: {}]  }
   0x1   :  { %s31_s19 = sshll.u32 %s4719_s4, 4  ;;  %s32_s19 = int_to_ptr.vmem [resolvable:$true] %s31_s19 }
   0x2   :  { %s3526_s20 = scalar_lea.vmem %s32_s19, 16  ;;  %p3531_p1 = scmp.lt.s32.totalorder %s32_s19, %s32_s19 }
   0x3   :  { %p3527_p0 = scmp.ne.s32.totalorder %s32_s19, %s3526_s20  ;;  %p3532_p2 = scmp.lt.s32.totalorder %s3526_s20, %s3526_s20 }
   0x5   :  { %p3533_p3 = por %p3532_p2, %p3531_p1 }
   0x7   :  { %p3534_p4 = pnand %p3533_p3, %p3527_p0 }
   0x9   :  { %3537 = shalt.err (!%p3534_p4)
}
   0xa   :  { %s3540_s21 = smov [#allocation4]  }
   0xb   :  { %34 = dma.vmem_to_smem %s32_s19, 16, %s3540_s21, [#allocation5]  }
   0xc   :  { %3538 = dma.done.wait [#allocation5], 16  }
   0xd   :  { %3539 = vsyncadd [#allocation5], 4294967280 }
   0xe   :  { %50 = sfence }
   0xf   :  { %v61_v0 = vld [vmem:[%s4715_s0] sm:$0xff]  ;;  %v76_v1 = vld [vmem:[%s4716_s1 + $0x8] sm:$0xff]  ;;  %v3541_v2 = vmov 1   ;;  %s3542_s4 = smov 2   ;;  %v77_v4 = vld [vmem:[%s4716_s1 + $0x10] sm:$0xff]  ;;  %vm51_vm0 = vcmask 15360  }
  0x10   :  { %3446 = vset.pattern.permute.xlu1 %v3541_v2  ;;  %63 = vrot.lane.b32.xlu0 %v61_v0, %s3542_s4  ;;  %v75_v3 = vld [vmem:[%s4716_s1] sm:$0xff]  ;;  %vm56_vm1 = vcmask 195760   ;;  %v4727_v5 = vmov 0.0   ;;  %v3544_v6 = vmov 2   ;;  %v78_v7 = vld [vmem:[%s4716_s1 + $0x18] sm:$0xff]  ;;  %v4730_v8 = vmov 0  }
  0x11   :  { %108 = vperm.xlu1 %3446, %v76_v1   ;;  %3445 = vset.pattern.permute.xlu0 %v3541_v2  ;;  %52 = vst.msk [vmem:[#allocation2] sm:$0xff] %vm51_vm0, %v4727_v5  ;;  %53 = vst.msk [vmem:[#allocation2 + $0x8] sm:$0xff] %vm51_vm0, %v4727_v5  ;;  %v183_v9 = vld [vmem:[%s4717_s2] sm:$0xff]  ;;  %v185_v10 = vld [vmem:[%s4717_s2 + $0x10] sm:$0xff]  ;;  %v3546_v12 = vmov 4   ;;  %v3547_v16 = vmov 10  }
  0x12   :  { %54 = vst.msk [vmem:[#allocation2 + $0x10] sm:$0xff] %vm51_vm0, %v4727_v5  ;;  %55 = vst.msk [vmem:[#allocation2 + $0x18] sm:$0xff] %vm51_vm0, %v4727_v5  ;;  %v3681_v11 = vld [vmem:[%s4718_s3] sm:$0xff]  ;;  %v184_v13 = vld [vmem:[%s4717_s2 + $0x8] sm:$0xff]  ;;  %v3548_v18 = vmov 8   ;;  %v3549_v19 = vmov 7  }
  0x13   :  { %57 = vst.msk [vmem:[#allocation2] sm:$0xff] %vm56_vm1, %v4727_v5  ;;  %58 = vst.msk [vmem:[#allocation2 + $0x8] sm:$0xff] %vm56_vm1, %v4727_v5  ;;  %v3690_v14 = vld [vmem:[%s4718_s3 + $0x10] sm:$0xff]  ;;  %v186_v15 = vld [vmem:[%s4717_s2 + $0x18] sm:$0xff]  ;;  %v3550_v21 = vmov 5   ;;  %v3551_v22 = vmov 19  }
  0x14   :  { %104 = vperm.xlu0 %3445, %v75_v3   ;;  %59 = vst.msk [vmem:[#allocation2 + $0x10] sm:$0xff] %vm56_vm1, %v4727_v5  ;;  %60 = vst.msk [vmem:[#allocation2 + $0x18] sm:$0xff] %vm56_vm1, %v4727_v5  ;;  %v3701_v17 = vld [vmem:[%s4718_s3 + $0x8] sm:$0xff]  ;;  %v3711_v20 = vld [vmem:[%s4718_s3 + $0x18] sm:$0xff]  ;;  %v3552_v23 = vmov 16   ;;  %v3553_v24 = vmov 13  }
  0x15   :  { %112 = vperm.xlu1 %3446, %v77_v4   ;;  %4738 = vst [vmem:[#allocation7_spill] sm:$0xff] %v3681_v11  ;;  %4739 = vst [vmem:[#allocation8_spill] sm:$0xff] %v3690_v14  ;;  %v3554_v25 = vmov 11   ;;  %vm66_vm2 = vcmask 179216   ;;  %v3555_v27 = vmov 14   ;;  %s3556_s3 = smov 127  }
  0x16   :  { %4740 = vst [vmem:[#allocation9_spill] sm:$0xff] %v3701_v17  ;;  %4741 = vst [vmem:[#allocation10_spill] sm:$0xff] %v3711_v20  ;;  %s3557_s4 = smov 126   ;;  %v3558_v40 = vmov 17   ;;  %v3559_v52 = vmov 22   ;;  %v3560_v60 = vmov 20  }
  0x17   :  { %s2700_s26 = sld [smem:[#allocation4 + $0x1]]  ;;  %s4250_s27 = sld [smem:[#allocation4 + $0x2]]  ;;  %vm3574_vm6 = vmmov 0   ;;  %vm361_vm7 = vcmask 130048   ;;  %vm460_vm8 = vcmask 261248   ;;  %vm559_vm9 = vcmask 392448  }
  0x18   :  { %3448 = vset.pattern.permute.xlu0 %v3544_v6  ;;  %s4255_s28 = sld [smem:[#allocation4 + $0x3]]  ;;  %s4263_s29 = sld [smem:[#allocation4 + $0x4]]  ;;  %vm658_vm10 = vcmask 523648   ;;  %vm757_vm11 = vcmask 654848   ;;  %vm856_vm12 = vcmask 786048   ;;  %vm955_vm13 = vcmask 917248  }
  0x19   :  { %3447 = vset.pattern.permute.xlu1 %v3544_v6  ;;  %148 = vperm.xlu0 %3448, %v76_v1   ;;  %s4277_s0 = sld [smem:[#allocation4 + $0x5]]  ;;  %s4291_s30 = sld [smem:[#allocation4 + $0x6]]  ;;  %vm1054_vm14 = vcmask 1048448   ;;  %vm1733_vm15 = vcmask 261120  }
  0x1a   :  { %144 = vperm.xlu1 %3447, %v75_v3   ;;  %s2706_s12 = sld [smem:[#allocation4 + $0x7]]  ;;  %s348_s13 = sld [smem:[#allocation4]] }
  0x1b   :  { %s3570_s2 = smov 16   ;;  %s3573_s18 = smov 64  }
  0x1c   :  { %s3577_s25 = smov 112  }
  0x1d   :  { %156 = vperm.xlu0 %3448, %v78_v7  }
  0x1e   :  { %3449 = vset.pattern.permute.xlu1 %v3541_v2 }
  0x1f   :  { %116 = vperm.xlu1 %3449, %v78_v7  }
  0x21   :  { %3452 = vset.pattern.permute.xlu0 %v4730_v8 }
  0x22   :  { %86 = vperm.xlu0 %3452, %v76_v1  }
  0x23   :  { %3450 = vset.pattern.permute.xlu1 %v3544_v6 }
  0x24   :  { %152 = vperm.xlu1 %3450, %v77_v4  }
  0x26   :  { %189 = vperm.xlu0 %3452, %v183_v9  }
  0x28   :  { %3451 = vset.pattern.permute.xlu1 %v4730_v8 }
  0x29   :  { %81 = vperm.xlu1 %3451, %v75_v3  }
  0x2a   :  { %199 = vperm.xlu0 %3452, %v185_v10  }
  0x2d   :  { %91 = vperm.xlu1 %3451, %v77_v4   ;;  %v4729_v4 = vmov 23  }
  0x2e   :  { %3453 = vset.pattern.permute.xlu0 %v3546_v12 }
  0x2f   :  { %388 = vperm.xlu0 %3453, %v3681_v11  }
  0x31   :  { %96 = vperm.xlu1 %3451, %v78_v7  }
  0x33   :  { %396 = vperm.xlu0 %3453, %v3690_v14  }
  0x35   :  { %194 = vperm.xlu1 %3451, %v184_v13  }
  0x37   :  { %3457 = vset.pattern.permute.xlu0 %v3547_v16 }
  0x38   :  { %586 = vperm.xlu0 %3457, %v3681_v11  }
  0x39   :  { %204 = vperm.xlu1 %3451, %v186_v15  }
  0x3c   :  { %3460 = vset.pattern.permute.xlu0 %v3548_v18 }
  0x3d   :  { %3454 = vset.pattern.permute.xlu1 %v3546_v12  ;;  %515 = vperm.xlu0 %3460, %v3681_v11  }
  0x3e   :  { %392 = vperm.xlu1 %3454, %v3701_v17  }
  0x41   :  { %3461 = vset.pattern.permute.xlu0 %v3549_v19 }
  0x42   :  { %3455 = vset.pattern.permute.xlu1 %v3549_v19  ;;  %491 = vperm.xlu0 %3461, %v3701_v17  }
  0x43   :  { %487 = vperm.xlu1 %3455, %v3681_v11  }
  0x46   :  { %499 = vperm.xlu0 %3461, %v3711_v20  }
  0x47   :  { %3456 = vset.pattern.permute.xlu1 %v3550_v21 }
  0x48   :  { %416 = vperm.xlu1 %3456, %v3681_v11  }
  0x4a   :  { %3472 = vset.pattern.permute.xlu0 %v3551_v22 }
  0x4b   :  { %887 = vperm.xlu0 %3472, %v3701_v17  }
  0x4c   :  { %420 = vperm.xlu1 %3456, %v3701_v17  }
  0x4f   :  { %3473 = vset.pattern.permute.xlu0 %v3550_v21 }
  0x50   :  { %3458 = vset.pattern.permute.xlu1 %v3547_v16  ;;  %424 = vperm.xlu0 %3473, %v3690_v14  }
  0x51   :  { %590 = vperm.xlu1 %3458, %v3701_v17  }
  0x54   :  { %428 = vperm.xlu0 %3473, %v3711_v20  }
  0x55   :  { %3459 = vset.pattern.permute.xlu1 %v3549_v19 }
  0x56   :  { %495 = vperm.xlu1 %3459, %v3690_v14  }
  0x58   :  { %3476 = vset.pattern.permute.xlu0 %v3552_v23 }
  0x59   :  { %792 = vperm.xlu0 %3476, %v3690_v14  }
  0x5a   :  { %3462 = vset.pattern.permute.xlu1 %v3548_v18 }
  0x5b   :  { %519 = vperm.xlu1 %3462, %v3701_v17  }
  0x5d   :  { %3477 = vset.pattern.permute.xlu0 %v3553_v24 }
  0x5f   :  { %3463 = vset.pattern.permute.xlu1 %v3553_v24 }
  0x60   :  { %685 = vperm.xlu1 %3463, %v3681_v11  }
  0x64   :  { %3464 = vset.pattern.permute.xlu1 %v3546_v12  ;;  %v3562_v12 = vmov 3  }
  0x65   :  { %400 = vperm.xlu1 %3464, %v3711_v20  }
  0x69   :  { %3465 = vset.pattern.permute.xlu1 %v3547_v16 }
  0x6a   :  { %594 = vperm.xlu1 %3465, %v3690_v14  }
  0x6e   :  { %3466 = vset.pattern.permute.xlu1 %v3554_v25 }
  0x6f   :  { %614 = vperm.xlu1 %3466, %v3681_v11  }
  0x73   :  { %3467 = vset.pattern.permute.xlu1 %v3552_v23 }
  0x74   :  { %784 = vperm.xlu1 %3467, %v3681_v11  }
  0x78   :  { %788 = vperm.xlu1 %3467, %v3701_v17  }
  0x7c   :  { %3468 = vset.pattern.permute.xlu1 %v3548_v18 }
  0x7d   :  { %523 = vperm.xlu1 %3468, %v3690_v14  }
  0x81   :  { %3469 = vset.pattern.permute.xlu1 %v3553_v24 }
  0x82   :  { %693 = vperm.xlu1 %3469, %v3690_v14   ;;  %v64_v26 = vpop.permute.xlu0 %63 }
  0x83   :  { %67 = vst.msk [vmem:[#allocation2] sm:$0xff] %vm66_vm2, %v64_v26  ;;  %68 = vst.msk [vmem:[#allocation2 + $0x8] sm:$0xff] %vm66_vm2, %v64_v26 }
  0x84   :  { %69 = vst.msk [vmem:[#allocation2 + $0x10] sm:$0xff] %vm66_vm2, %v64_v26  ;;  %70 = vst.msk [vmem:[#allocation2 + $0x18] sm:$0xff] %vm66_vm2, %v64_v26 }
  0x86   :  { %3470 = vset.pattern.permute.xlu1 %v3555_v27 }
  0x87   :  { %717 = vperm.xlu1 %3470, %v3701_v17  }
  0x8a   :  { %v3743_v29 = vld [vmem:[#allocation2 + $0x8] sm:$0xff]  ;;  %v3754_v35 = vld [vmem:[#allocation2] sm:$0xff] }
  0x8b   :  { %3471 = vset.pattern.permute.xlu1 %v3551_v22  ;;  %v3749_v33 = vld [vmem:[#allocation2 + $0x10] sm:$0xff]  ;;  %v3762_v42 = vld [vmem:[#allocation2 + $0x18] sm:$0xff] }
  0x8c   :  { %883 = vperm.xlu1 %3471, %v3681_v11  }
  0x90   :  { %v109_v28 = vpop.permute.xlu1 %108  ;;  %3474 = vset.pattern.permute.xlu1 %v3547_v16 }
  0x91   :  { %v120_v30 = vmul.f32 %v109_v28, %v3743_v29  ;;  %598 = vperm.xlu1 %3474, %v3711_v20  }
  0x93   :  { %v105_v31 = vpop.permute.xlu0 %104  ;;  %129 = vrot.lane.b32.xlu0 %v120_v30, %s3556_s3 }
  0x94   :  { %v113_v32 = vpop.permute.xlu1 %112  ;;  %v119_v36 = vmul.f32 %v105_v31, %v3754_v35 }
  0x95   :  { %v121_v34 = vmul.f32 %v113_v32, %v3749_v33  ;;  %3475 = vset.pattern.permute.xlu1 %v3554_v25 }
  0x96   :  { %622 = vperm.xlu1 %3475, %v3690_v14  }
  0x97   :  { %131 = vrot.lane.b32.xlu0 %v121_v34, %s3556_s3 }
  0x98   :  { %v149_v37 = vpop.permute.xlu0 %148 }
  0x99   :  { %v160_v38 = vmul.f32 %v149_v37, %v3743_v29  ;;  %v145_v39 = vpop.permute.xlu1 %144 }
  0x9a   :  { %127 = vrot.lane.b32.xlu1 %v119_v36, %s3556_s3  ;;  %v159_v41 = vmul.f32 %v145_v39, %v3754_v35  ;;  %v3564_v36 = vmov 6  }
  0x9b   :  { %169 = vrot.lane.b32.xlu0 %v160_v38, %s3557_s4  ;;  %3478 = vset.pattern.permute.xlu1 %v3558_v40 }
  0x9c   :  { %v157_v47 = vpop.permute.xlu0 %156 }
  0x9d   :  { %v162_v48 = vmul.f32 %v157_v47, %v3762_v42 }
  0x9e   :  { %v117_v43 = vpop.permute.xlu1 %116  ;;  %167 = vrot.lane.b32.xlu1 %v159_v41, %s3557_s4 }
  0x9f   :  { %v122_v44 = vmul.f32 %v117_v43, %v3762_v42 }
  0xa1   :  { %v3792_v55 = vpop.permute.xlu0 %86 }
  0xa2   :  { %133 = vrot.lane.b32.xlu1 %v122_v44, %s3556_s3  ;;  %v100_v37 = vmul.f32 %v3792_v55, %v3743_v29 }
  0xa3   :  { %v153_v45 = vpop.permute.xlu1 %152 }
  0xa4   :  { %v161_v46 = vmul.f32 %v153_v45, %v3749_v33 }
  0xa5   :  { %v3800_v57 = vpop.permute.xlu0 %189 }
  0xa6   :  { %171 = vrot.lane.b32.xlu0 %v161_v46, %s3557_s4  ;;  %812 = vperm.xlu1 %3478, %v3681_v11  }
  0xa8   :  { %v3771_v49 = vpop.permute.xlu1 %81 }
  0xa9   :  { %v3807_v59 = vpop.permute.xlu0 %199  ;;  %v99_v47 = vmul.f32 %v3771_v49, %v3754_v35 }
  0xaa   :  { %173 = vrot.lane.b32.xlu1 %v162_v48, %s3557_s4  ;;  %689 = vperm.xlu0 %3477, %v3701_v17  }
  0xac   :  { %v3775_v50 = vpop.permute.xlu1 %91 }
  0xae   :  { %816 = vperm.xlu1 %3478, %v3701_v17   ;;  %697 = vperm.xlu0 %3477, %v3711_v20   ;;  %v3814_v62 = vpop.permute.xlu0 %388 }
  0xb0   :  { %v3779_v51 = vpop.permute.xlu1 %96 }
  0xb2   :  { %3479 = vset.pattern.permute.xlu1 %v3559_v52  ;;  %3481 = vset.pattern.permute.xlu0 %v3554_v25  ;;  %v3822_v0 = vpop.permute.xlu0 %396 }
  0xb3   :  { %986 = vperm.xlu1 %3479, %v3701_v17   ;;  %618 = vperm.xlu0 %3481, %v3701_v17  }
  0xb4   :  { %v3785_v53 = vpop.permute.xlu1 %194 }
  0xb7   :  { %3480 = vset.pattern.permute.xlu1 %v3548_v18  ;;  %626 = vperm.xlu0 %3481, %v3711_v20   ;;  %v3831_v7 = vpop.permute.xlu0 %586 }
  0xb8   :  { %v3789_v54 = vpop.permute.xlu1 %204  ;;  %527 = vperm.xlu1 %3480, %v3711_v20  }
  0xbb   :  { %3485 = vset.pattern.permute.xlu0 %v3559_v52 }
  0xbc   :  { %3482 = vset.pattern.permute.xlu1 %v3555_v27  ;;  %982 = vperm.xlu0 %3485, %v3681_v11   ;;  %v3838_v10 = vpop.permute.xlu0 %515 }
  0xbd   :  { %v3797_v56 = vpop.permute.xlu1 %392  ;;  %721 = vperm.xlu1 %3482, %v3690_v14  }
  0xc0   :  { %990 = vperm.xlu0 %3485, %v3690_v14  }
  0xc1   :  { %3483 = vset.pattern.permute.xlu1 %v3551_v22  ;;  %v3847_v15 = vpop.permute.xlu0 %491 }
  0xc2   :  { %v3804_v58 = vpop.permute.xlu1 %487  ;;  %891 = vperm.xlu1 %3483, %v3690_v14  }
  0xc4   :  { %3488 = vset.pattern.permute.xlu0 %v3555_v27 }
  0xc5   :  { %713 = vperm.xlu0 %3488, %v3681_v11   ;;  %v3854_v18 = vpop.permute.xlu0 %499 }
  0xc6   :  { %3484 = vset.pattern.permute.xlu1 %v3560_v60 }
  0xc7   :  { %v3811_v61 = vpop.permute.xlu1 %416  ;;  %915 = vperm.xlu1 %3484, %v3701_v17  }
  0xc9   :  { %725 = vperm.xlu0 %3488, %v3711_v20  }
  0xca   :  { %v3862_v21 = vpop.permute.xlu0 %887 }
  0xcb   :  { %v3817_v63 = vpop.permute.xlu1 %420  ;;  %3486 = vset.pattern.permute.xlu1 %v3552_v23 }
  0xcc   :  { %796 = vperm.xlu1 %3486, %v3711_v20  }
  0xcd   :  { %3492 = vset.pattern.permute.xlu0 %v3558_v40 }
  0xce   :  { %824 = vperm.xlu0 %3492, %v3711_v20  }
  0xcf   :  { %v3871_v25 = vpop.permute.xlu0 %424 }
  0xd0   :  { %v3824_v1 = vpop.permute.xlu1 %590  ;;  %3487 = vset.pattern.permute.xlu1 %v3558_v40 }
  0xd1   :  { %820 = vperm.xlu1 %3487, %v3690_v14  }
  0xd2   :  { %3493 = vset.pattern.permute.xlu0 %v3560_v60 }
  0xd3   :  { %911 = vperm.xlu0 %3493, %v3681_v11   ;;  %v3877_v27 = vpop.permute.xlu0 %428 }
  0xd5   :  { %v3828_v3 = vpop.permute.xlu1 %495  ;;  %3489 = vset.pattern.permute.xlu1 %v4729_v4 }
  0xd6   :  { %1010 = vperm.xlu1 %3489, %v3681_v11  }
  0xd7   :  { %923 = vperm.xlu0 %3493, %v3711_v20  }
  0xd8   :  { %v3883_v30 = vpop.permute.xlu0 %792 }
  0xda   :  { %v3835_v9 = vpop.permute.xlu1 %519  ;;  %1014 = vperm.xlu1 %3489, %v3701_v17  }
  0xdb   :  { %3500 = vset.pattern.permute.xlu0 %v3562_v12 }
  0xdc   :  { %372 = vperm.xlu0 %3500, %v3690_v14  }
  0xde   :  { %3490 = vset.pattern.permute.xlu1 %v3551_v22  ;;  %v3563_v22 = vmov 9  }
  0xdf   :  { %v3843_v13 = vpop.permute.xlu1 %685  ;;  %895 = vperm.xlu1 %3490, %v3711_v20  }
  0xe0   :  { %3501 = vset.pattern.permute.xlu0 %v3541_v2 }
  0xe1   :  { %297 = vperm.xlu0 %3501, %v3701_v17  }
  0xe3   :  { %3491 = vset.pattern.permute.xlu1 %v3560_v60 }
  0xe4   :  { %v3850_v16 = vpop.permute.xlu1 %400  ;;  %919 = vperm.xlu1 %3491, %v3690_v14  }
  0xe5   :  { %301 = vperm.xlu0 %3501, %v3690_v14  }
  0xe8   :  { %3494 = vset.pattern.permute.xlu1 %v3559_v52 }
  0xe9   :  { %v3857_v19 = vpop.permute.xlu1 %594  ;;  %994 = vperm.xlu1 %3494, %v3711_v20   ;;  %305 = vperm.xlu0 %3501, %v3711_v20  }
  0xed   :  { %3495 = vset.pattern.permute.xlu1 %v4729_v4  ;;  %3507 = vset.pattern.permute.xlu0 %v3563_v22 }
  0xee   :  { %v3865_v23 = vpop.permute.xlu1 %614  ;;  %1018 = vperm.xlu1 %3495, %v3690_v14  }
  0xf2   :  { %1022 = vperm.xlu1 %3495, %v3711_v20  }
  0xf3   :  { %v3869_v24 = vpop.permute.xlu1 %784 }
  0xf6   :  { %3496 = vset.pattern.permute.xlu1 %v3541_v2 }
  0xf7   :  { %v3874_v26 = vpop.permute.xlu1 %788  ;;  %293 = vperm.xlu1 %3496, %v3681_v11  }
  0xfb   :  { %3497 = vset.pattern.permute.xlu1 %v3562_v12 }
  0xfc   :  { %v3880_v28 = vpop.permute.xlu1 %523  ;;  %364 = vperm.xlu1 %3497, %v3681_v11  }
 0x100   :  { %368 = vperm.xlu1 %3497, %v3701_v17  }
 0x101   :  { %v3886_v31 = vpop.permute.xlu1 %693 }
 0x104   :  { %3498 = vset.pattern.permute.xlu1 %v3544_v6 }
 0x105   :  { %v130_v2 = vpop.permute.xlu0 %129  ;;  %321 = vperm.xlu1 %3498, %v3681_v11  }
 0x106   :  { %v3890_v32 = vpop.permute.xlu1 %717  ;;  %v140_v39 = vadd.f32 %v130_v2, %v100_v37 }
 0x109   :  { %v132_v34 = vpop.permute.xlu0 %131  ;;  %3499 = vset.pattern.permute.xlu1 %v3564_v36 }
 0x10a   :  { %463 = vperm.xlu1 %3499, %v3681_v11  }
 0x10b   :  { %v3896_v38 = vpop.permute.xlu1 %883 }
 0x10d   :  { %v170_v40 = vpop.permute.xlu0 %169 }
 0x10e   :  { %v180_v41 = vadd.f32 %v170_v40, %v140_v39  ;;  %467 = vperm.xlu1 %3499, %v3701_v17  }
 0x110   :  { %v208_v43 = vadd.f32 %v3785_v53, %v180_v41  ;;  %v3900_v44 = vpop.permute.xlu1 %598  ;;  %v101_v53 = vmul.f32 %v3775_v50, %v3749_v33  ;;  %v102_v33 = vmul.f32 %v3779_v51, %v3762_v42 }
 0x112   :  { %v3902_v45 = vmax.f32 %v208_v43, 0.0  ;;  %3502 = vset.pattern.permute.xlu1 %v3563_v22  ;;  %v141_v2 = vadd.f32 %v132_v34, %v101_v53  ;;  %v3568_v53 = vmov 21  }
 0x113   :  { %562 = vperm.xlu1 %3502, %v3681_v11  }
 0x114   :  { %237 = vrot.lane.b32.xlu0 %v3902_v45, %s3557_s4 }
 0x115   :  { %v3908_v29 = vpop.permute.xlu1 %622 }
 0x117   :  { %566 = vperm.xlu1 %3502, %v3701_v17  }
 0x118   :  { %570 = vperm.xlu0 %3507, %v3690_v14   ;;  %v172_v60 = vpop.permute.xlu0 %171 }
 0x119   :  { %v128_v46 = vpop.permute.xlu1 %127  ;;  %v181_v35 = vadd.f32 %v172_v60, %v141_v2 }
 0x11a   :  { %v139_v48 = vadd.f32 %v128_v46, %v99_v47  ;;  %v4731_v46 = vmov 15  }
 0x11b   :  { %3503 = vset.pattern.permute.xlu1 %v3544_v6  ;;  %v209_v50 = vadd.f32 %v3807_v59, %v181_v35  ;;  %v3567_v59 = vmov 12  }
 0x11c   :  { %3508 = vset.pattern.permute.xlu0 %v3544_v6  ;;  %v4732_v6 = vmov 18  }
 0x11d   :  { %325 = vperm.xlu0 %3508, %v3701_v17   ;;  %v168_v52 = vpop.permute.xlu1 %167  ;;  %v3934_v41 = vmax.f32 %v209_v50, 0.0 }
 0x11e   :  { %v179_v55 = vadd.f32 %v168_v52, %v139_v48 }
 0x120   :  { %v207_v37 = vadd.f32 %v3800_v57, %v179_v55 }
 0x121   :  { %333 = vperm.xlu0 %3508, %v3711_v20   ;;  %v134_v39 = vpop.permute.xlu1 %133 }
 0x122   :  { %v3921_v49 = vmax.f32 %v207_v37, 0.0  ;;  %v142_v57 = vadd.f32 %v134_v39, %v102_v33 }
 0x124   :  { %219 = vrot.lane.b32.xlu1 %v3921_v49, %s3556_s3 }
 0x125   :  { %3512 = vset.pattern.permute.xlu0 %v4732_v6  ;;  %v3926_v40 = vpop.permute.xlu1 %812 }
 0x126   :  { %859 = vperm.xlu0 %3512, %v3681_v11  }
 0x128   :  { %221 = vrot.lane.b32.xlu1 %v3902_v45, %s3556_s3 }
 0x129   :  { %v174_v34 = vpop.permute.xlu1 %173  ;;  %v3971_v2 = vpop.permute.xlu0 %689 }
 0x12a   :  { %v182_v43 = vadd.f32 %v174_v34, %v142_v57  ;;  %3515 = vset.pattern.permute.xlu0 %v4731_v46 }
 0x12b   :  { %768 = vperm.xlu0 %3515, %v3690_v14  }
 0x12c   :  { %223 = vrot.lane.b32.xlu1 %v3934_v41, %s3556_s3  ;;  %v210_v51 = vadd.f32 %v3789_v54, %v182_v43 }
 0x12d   :  { %v3940_v42 = vpop.permute.xlu1 %816  ;;  %v3979_v35 = vpop.permute.xlu0 %697 }
 0x12e   :  { %4742 = vst [vmem:[#allocation11_spill] sm:$0xff] %v3940_v42  ;;  %v3946_v47 = vmax.f32 %v210_v51, 0.0 }
 0x12f   :  { %3516 = vset.pattern.permute.xlu0 %v3567_v59 }
 0x130   :  { %661 = vperm.xlu0 %3516, %v3681_v11   ;;  %235 = vrot.lane.b32.xlu1 %v3921_v49, %s3557_s4 }
 0x132   :  { %v3948_v48 = vpop.permute.xlu1 %986  ;;  %v3985_v50 = vpop.permute.xlu0 %618 }
 0x134   :  { %673 = vperm.xlu0 %3516, %v3711_v20   ;;  %225 = vrot.lane.b32.xlu1 %v3946_v47, %s3556_s3 }
 0x137   :  { %v3953_v52 = vpop.permute.xlu1 %527 }
 0x138   :  { %3520 = vset.pattern.permute.xlu0 %v3568_v53  ;;  %239 = vrot.lane.b32.xlu1 %v3934_v41, %s3557_s4 }
 0x139   :  { %966 = vperm.xlu0 %3520, %v3690_v14  }
 0x13c   :  { %v3958_v54 = vpop.permute.xlu1 %721  ;;  %241 = vrot.lane.b32.xlu1 %v3946_v47, %s3557_s4 }
 0x13d   :  { %3523 = vset.pattern.permute.xlu0 %v4730_v8 }
 0x140   :  { %329 = vperm.xlu1 %3503, %v3690_v14  }
 0x141   :  { %v3964_v55 = vpop.permute.xlu1 %891 }
 0x144   :  { %3504 = vset.pattern.permute.xlu1 %v3564_v36 }
 0x145   :  { %471 = vperm.xlu1 %3504, %v3690_v14  }
 0x146   :  { %v3968_v60 = vpop.permute.xlu1 %915 }
 0x147   :  { %4743 = vst [vmem:[#allocation12_spill] sm:$0xff] %v3968_v60  ;;  %v4755_v60 = vmov 15  }
 0x149   :  { %3505 = vset.pattern.permute.xlu1 %v3567_v59 }
 0x14a   :  { %665 = vperm.xlu1 %3505, %v3701_v17  }
 0x14b   :  { %v3973_v37 = vpop.permute.xlu1 %796 }
 0x14e   :  { %3506 = vset.pattern.permute.xlu1 %v3562_v12  ;;  %v3991_v12 = vpop.permute.xlu0 %626 }
 0x14f   :  { %376 = vperm.xlu1 %3506, %v3711_v20  }
 0x150   :  { %v3977_v39 = vpop.permute.xlu1 %820 }
 0x151   :  { %4744 = vst [vmem:[#allocation13_spill] sm:$0xff] %v3977_v39 }
 0x152   :  { %v3997_v43 = vpop.permute.xlu0 %982 }
 0x153   :  { %3509 = vset.pattern.permute.xlu1 %v4731_v46 }
 0x154   :  { %760 = vperm.xlu1 %3509, %v3681_v11  }
 0x155   :  { %v3983_v33 = vpop.permute.xlu1 %1010 }
 0x156   :  { %4745 = vst [vmem:[#allocation14_spill] sm:$0xff] %v3983_v33 }
 0x158   :  { %764 = vperm.xlu1 %3509, %v3701_v17  }
 0x159   :  { %v3988_v57 = vpop.permute.xlu1 %1014 }
 0x15a   :  { %4746 = vst [vmem:[#allocation15_spill] sm:$0xff] %v3988_v57 }
 0x15c   :  { %3510 = vset.pattern.permute.xlu1 %v3564_v36  ;;  %v4005_v36 = vpop.permute.xlu0 %990 }
 0x15d   :  { %475 = vperm.xlu1 %3510, %v3711_v20  }
 0x15e   :  { %v3994_v34 = vpop.permute.xlu1 %895 }
 0x161   :  { %3511 = vset.pattern.permute.xlu1 %v3567_v59  ;;  %v4011_v59 = vpop.permute.xlu0 %713 }
 0x162   :  { %669 = vperm.xlu1 %3511, %v3690_v14  }
 0x163   :  { %v3999_v51 = vpop.permute.xlu1 %919 }
 0x164   :  { %4747 = vst [vmem:[#allocation16_spill] sm:$0xff] %v3999_v51  ;;  %v4752_v51 = vmov 18  }
 0x165   :  { %v4016_v46 = vpop.permute.xlu0 %725 }
 0x166   :  { %3513 = vset.pattern.permute.xlu1 %v4732_v6 }
 0x167   :  { %863 = vperm.xlu1 %3513, %v3701_v17  }
 0x168   :  { %v4003_v5 = vpop.permute.xlu1 %994 }
 0x169   :  { %4748 = vst [vmem:[#allocation17_spill] sm:$0xff] %v4003_v5 }
 0x16b   :  { %3514 = vset.pattern.permute.xlu1 %v3563_v22  ;;  %v4023_v22 = vpop.permute.xlu0 %824 }
 0x16c   :  { %574 = vperm.xlu1 %3514, %v3711_v20   ;;  %4753 = vst [vmem:[#allocation21_spill] sm:$0xff] %v4023_v22  ;;  %v251_v22 = vlaneseq }
 0x16d   :  { %v4009_v4 = vpop.permute.xlu1 %1018 }
 0x16e   :  { %4749 = vst [vmem:[#allocation18_spill] sm:$0xff] %v4009_v4  ;;  %v252_v5 = vand.u32 127, %v251_v22 }
 0x170   :  { %3517 = vset.pattern.permute.xlu1 %v3568_v53  ;;  %vm253_vm3 = vcmp.ge.s32.totalorder %v252_v5, 1  ;;  %vm254_vm4 = vcmp.le.s32.totalorder %v252_v5, 18 }
 0x171   :  { %v4013_v8 = vpop.permute.xlu1 %1022  ;;  %958 = vperm.xlu1 %3517, %v3681_v11   ;;  %v4031_v11 = vpop.permute.xlu0 %911  ;;  %vm4055_vm5 = vmand %vm253_vm3, %vm254_vm4 }
 0x172   :  { %4750 = vst [vmem:[#allocation19_spill] sm:$0xff] %v4013_v8  ;;  %4757 = vst [vmem:[#allocation24_spill] sm:$0xff] %v4031_v11 }
 0x175   :  { %962 = vperm.xlu1 %3517, %v3701_v17  }
 0x176   :  { %v4019_v6 = vpop.permute.xlu1 %293 }
 0x177   :  { %4751 = vst [vmem:[#allocation20_spill] sm:$0xff] %v4019_v6  ;;  %v4037_v6 = vpop.permute.xlu0 %923 }
 0x178   :  { %4759 = vst [vmem:[#allocation26_spill] sm:$0xff] %v4037_v6 }
 0x179   :  { %3518 = vset.pattern.permute.xlu1 %v4752_v51 }
 0x17a   :  { %867 = vperm.xlu1 %3518, %v3690_v14  }
 0x17b   :  { %v4025_v4 = vpop.permute.xlu1 %364 }
 0x17c   :  { %4754 = vst [vmem:[#allocation22_spill] sm:$0xff] %v4025_v4  ;;  %v4040_v4 = vpop.permute.xlu0 %372 }
 0x17d   :  { %4760 = vst [vmem:[#allocation27_spill] sm:$0xff] %v4040_v4 }
 0x17e   :  { %3519 = vset.pattern.permute.xlu1 %v4755_v60 }
 0x17f   :  { %v4028_v57 = vpop.permute.xlu1 %368  ;;  %772 = vperm.xlu1 %3519, %v3711_v20  }
 0x180   :  { %4756 = vst [vmem:[#allocation23_spill] sm:$0xff] %v4028_v57  ;;  %v4761_v57 = vmov 0   ;;  %v4045_v11 = vpop.permute.xlu0 %297 }
 0x181   :  { %4763 = vst [vmem:[#allocation29_spill] sm:$0xff] %v4045_v11 }
 0x183   :  { %3521 = vset.pattern.permute.xlu1 %v4752_v51 }
 0x184   :  { %v4034_v17 = vpop.permute.xlu1 %321  ;;  %871 = vperm.xlu1 %3521, %v3711_v20  }
 0x185   :  { %4758 = vst [vmem:[#allocation25_spill] sm:$0xff] %v4034_v17  ;;  %v4049_v17 = vpop.permute.xlu0 %301 }
 0x186   :  { %4765 = vst [vmem:[#allocation31_spill] sm:$0xff] %v4049_v17 }
 0x188   :  { %3522 = vset.pattern.permute.xlu1 %v3568_v53 }
 0x189   :  { %v464_v14 = vpop.permute.xlu1 %463  ;;  %970 = vperm.xlu1 %3522, %v3711_v20   ;;  %v4051_v53 = vpop.permute.xlu0 %305 }
 0x18d   :  { %v468_v60 = vpop.permute.xlu1 %467  ;;  %3524 = vset.pattern.permute.xlu1 %v4761_v57  ;;  %v238_v57 = vpop.permute.xlu0 %237 }
 0x192   :  { %v4043_v8 = vpop.permute.xlu1 %562 }
 0x193   :  { %4762 = vst [vmem:[#allocation28_spill] sm:$0xff] %v4043_v8 }
 0x196   :  { %v4047_v51 = vpop.permute.xlu1 %566 }
 0x197   :  { %4764 = vst [vmem:[#allocation30_spill] sm:$0xff] %v4047_v51 }
 0x19a   :  { %v220_v33 = vpop.permute.xlu1 %219 }
 0x19b   :  { %v231_v8 = vmax.f32 %v3921_v49, %v220_v33 }
 0x19e   :  { %v222_v6 = vpop.permute.xlu1 %221 }
 0x19f   :  { %v232_v20 = vmax.f32 %v3902_v45, %v222_v6 }
 0x1a1   :  { %v248_v39 = vmax.f32 %v232_v20, %v238_v57 }
 0x1a2   :  { %v224_v4 = vpop.permute.xlu1 %223 }
 0x1a3   :  { %v4061_v42 = vsel %vm4055_vm5, %v248_v39, 0.0  ;;  %v233_v5 = vmax.f32 %v3934_v41, %v224_v4 }
 0x1a4   :  { %v479_v20 = vmul.f32 %v468_v60, %v4061_v42  ;;  %v602_v41 = vmul.f32 %v3824_v1, %v4061_v42  ;;  %v531_v1 = vmul.f32 %v3835_v9, %v4061_v42 }
 0x1a6   :  { %v236_v11 = vpop.permute.xlu1 %235 }
 0x1a7   :  { %v247_v17 = vmax.f32 %v231_v8, %v236_v11  ;;  %v503_v8 = vmul.f32 %v3847_v15, %v4061_v42  ;;  %v404_v11 = vmul.f32 %v3797_v56, %v4061_v42  ;;  %v432_v56 = vmul.f32 %v3817_v63, %v4061_v42 }
 0x1a9   :  { %v4065_v45 = vsel %vm4055_vm5, %v247_v17, 0.0 }
 0x1aa   :  { %v226_v6 = vpop.permute.xlu1 %225  ;;  %v478_v49 = vmul.f32 %v464_v14, %v4065_v45  ;;  %v502_v17 = vmul.f32 %v3804_v58, %v4065_v45  ;;  %v403_v4 = vmul.f32 %v3814_v62, %v4065_v45  ;;  %v601_v14 = vmul.f32 %v3831_v7, %v4065_v45 }
 0x1ab   :  { %v234_v60 = vmax.f32 %v3946_v47, %v226_v6  ;;  %v701_v58 = vmul.f32 %v3971_v2, %v4061_v42  ;;  %v630_v47 = vmul.f32 %v3985_v50, %v4061_v42  ;;  %v431_v63 = vmul.f32 %v3811_v61, %v4065_v45 }
 0x1ac   :  { %v4074_v39 = vadd.f32 %v479_v20, %v478_v49  ;;  %v700_v2 = vmul.f32 %v3843_v13, %v4065_v45  ;;  %v407_v49 = vadd.f32 %v404_v11, %v403_v4  ;;  %v605_v20 = vadd.f32 %v602_v41, %v601_v14 }
 0x1ad   :  { %v629_v13 = vmul.f32 %v3865_v23, %v4065_v45  ;;  %v435_v51 = vadd.f32 %v432_v56, %v431_v63 }
 0x1ae   :  { %v240_v33 = vpop.permute.xlu1 %239 }
 0x1af   :  { %v249_v22 = vmax.f32 %v233_v5, %v240_v33  ;;  %v530_v5 = vmul.f32 %v3838_v10, %v4065_v45  ;;  %v633_v41 = vadd.f32 %v630_v47, %v629_v13  ;;  %v898_v47 = vmul.f32 %v3896_v38, %v4065_v45 }
 0x1b1   :  { %v4087_v15 = vsel %vm4055_vm5, %v249_v22, 0.0  ;;  %v534_v11 = vadd.f32 %v531_v1, %v530_v5  ;;  %v729_v5 = vmul.f32 %v3890_v32, %v4061_v42 }
 0x1b2   :  { %v242_v57 = vpop.permute.xlu1 %241  ;;  %v504_v62 = vmul.f32 %v3828_v3, %v4087_v15  ;;  %v405_v7 = vmul.f32 %v3822_v0, %v4087_v15  ;;  %v506_v3 = vadd.f32 %v503_v8, %v502_v17  ;;  %v998_v0 = vmul.f32 %v3948_v48, %v4061_v42 }
 0x1b3   :  { %v250_v6 = vmax.f32 %v234_v60, %v242_v57  ;;  %v603_v50 = vmul.f32 %v3857_v19, %v4087_v15  ;;  %v433_v61 = vmul.f32 %v3871_v25, %v4087_v15  ;;  %v704_v8 = vadd.f32 %v701_v58, %v700_v2 }
 0x1b4   :  { %v507_v33 = vadd.f32 %v506_v3, %v504_v62  ;;  %v408_v22 = vadd.f32 %v407_v49, %v405_v7  ;;  %v997_v19 = vmul.f32 %v3997_v43, %v4065_v45  ;;  %v702_v14 = vmul.f32 %v3886_v31, %v4087_v15 }
 0x1b5   :  { %v4111_v9 = vsel %vm4055_vm5, %v250_v6, 0.0  ;;  %v436_v43 = vadd.f32 %v435_v51, %v433_v61  ;;  %v631_v60 = vmul.f32 %v3908_v29, %v4087_v15  ;;  %v999_v7 = vmul.f32 %v4005_v36, %v4087_v15  ;;  %v4768_v61 = vld [vmem:[#allocation11_spill] sm:$0xff]  ;;  %v4772_v51 = vld [vmem:[#allocation17_spill] sm:$0xff] }
 0x1b6   :  { %v505_v10 = vmul.f32 %v3854_v18, %v4111_v9  ;;  %v406_v48 = vmul.f32 %v3850_v16, %v4111_v9  ;;  %v604_v25 = vmul.f32 %v3900_v44, %v4111_v9  ;;  %v434_v23 = vmul.f32 %v3877_v27, %v4111_v9 }
 0x1b7   :  { %v606_v18 = vadd.f32 %v605_v20, %v603_v50  ;;  %v532_v16 = vmul.f32 %v3880_v28, %v4087_v15  ;;  %v632_v44 = vmul.f32 %v3991_v12, %v4111_v9  ;;  %v703_v27 = vmul.f32 %v3979_v35, %v4111_v9  ;;  %v571_v50 = vpop.permute.xlu0 %570 }
 0x1b8   :  { %v508_v17 = vadd.f32 %v507_v33, %v505_v10  ;;  %v409_v4 = vadd.f32 %v408_v22, %v406_v48  ;;  %v533_v31 = vmul.f32 %v3953_v52, %v4111_v9  ;;  %v799_v28 = vmul.f32 %v3869_v24, %v4065_v45 }
 0x1b9   :  { %v1001_v56 = vadd.f32 %v998_v0, %v997_v19  ;;  %v607_v58 = vadd.f32 %v606_v18, %v604_v25  ;;  %v437_v57 = vadd.f32 %v436_v43, %v434_v23  ;;  %v634_v62 = vadd.f32 %v633_v41, %v631_v60  ;;  %v4774_v18 = vld [vmem:[#allocation14_spill] sm:$0xff]  ;;  %v4776_v43 = vld [vmem:[#allocation15_spill] sm:$0xff] }
 0x1ba   :  { %510 = vrot.lane.b32.xlu1 %v508_v17, %s3556_s3  ;;  %411 = vrot.lane.b32.xlu0 %v409_v4, %s3556_s3  ;;  %v705_v29 = vadd.f32 %v704_v8, %v702_v14  ;;  %v800_v12 = vmul.f32 %v3874_v26, %v4061_v42  ;;  %v801_v35 = vmul.f32 %v3883_v30, %v4087_v15 }
 0x1bb   :  { %v535_v52 = vadd.f32 %v534_v11, %v532_v16  ;;  %v635_v24 = vadd.f32 %v634_v62, %v632_v44  ;;  %v1002_v1 = vadd.f32 %v1001_v56, %v999_v7  ;;  %v728_v36 = vmul.f32 %v4011_v59, %v4065_v45  ;;  %v4773_v11 = vld [vmem:[#allocation21_spill] sm:$0xff]  ;;  %v4775_v16 = vld [vmem:[#allocation24_spill] sm:$0xff]  ;;  %v4778_v56 = vld [vmem:[#allocation18_spill] sm:$0xff] }
 0x1bc   :  { %v706_v6 = vadd.f32 %v705_v29, %v703_v27  ;;  %v802_v26 = vmul.f32 %v3973_v37, %v4111_v9  ;;  %v803_v2 = vadd.f32 %v800_v12, %v799_v28  ;;  %v899_v30 = vmul.f32 %v3862_v21, %v4061_v42  ;;  %v4777_v44 = vld [vmem:[#allocation12_spill] sm:$0xff]  ;;  %v4780_v29 = vld [vmem:[#allocation19_spill] sm:$0xff] }
 0x1bd   :  { %v536_v63 = vadd.f32 %v535_v52, %v533_v31  ;;  %v900_v59 = vmul.f32 %v3964_v55, %v4087_v15  ;;  %v730_v3 = vmul.f32 %v3958_v54, %v4087_v15  ;;  %v827_v37 = vmul.f32 %v3926_v40, %v4065_v45  ;;  %v4769_v55 = vld [vmem:[#allocation13_spill] sm:$0xff]  ;;  %v4770_v54 = vld [vmem:[#allocation28_spill] sm:$0xff]  ;;  %v4771_v40 = vld [vmem:[#allocation30_spill] sm:$0xff] }
 0x1be   :  { %609 = vrot.lane.b32.xlu1 %v607_v58, %s3556_s3  ;;  %439 = vrot.lane.b32.xlu0 %v437_v57, %s3557_s4  ;;  %v804_v38 = vadd.f32 %v803_v2, %v801_v35  ;;  %v902_v49 = vadd.f32 %v899_v30, %v898_v47  ;;  %v901_v21 = vmul.f32 %v3994_v34, %v4111_v9  ;;  %v4779_v57 = vld [vmem:[#allocation16_spill] sm:$0xff] }
 0x1bf   :  { %v731_v32 = vmul.f32 %v4016_v46, %v4111_v9  ;;  %v732_v0 = vadd.f32 %v729_v5, %v728_v36  ;;  %v828_v13 = vmul.f32 %v4768_v61, %v4061_v42  ;;  %v829_v10 = vmul.f32 %v4769_v55, %v4087_v15 }
 0x1c0   :  { %v805_v20 = vadd.f32 %v804_v38, %v802_v26  ;;  %v577_v33 = vmul.f32 %v4770_v54, %v4065_v45  ;;  %v578_v48 = vmul.f32 %v4771_v40, %v4061_v42  ;;  %v903_v34 = vadd.f32 %v902_v49, %v900_v59  ;;  %v326_v38 = vpop.permute.xlu0 %325 }
 0x1c1   :  { %v733_v46 = vadd.f32 %v732_v0, %v730_v3  ;;  %v579_v22 = vmul.f32 %v571_v50, %v4087_v15  ;;  %v1000_v8 = vmul.f32 %v4772_v51, %v4111_v9  ;;  %v830_v19 = vmul.f32 %v4773_v11, %v4111_v9  ;;  %v4785_v0 = vld [vmem:[#allocation7_spill] sm:$0xff]  ;;  %v4786_v50 = vld [vmem:[#allocation29_spill] sm:$0xff] }
 0x1c2   :  { %708 = vrot.lane.b32.xlu1 %v706_v6, %s3556_s3  ;;  %538 = vrot.lane.b32.xlu0 %v536_v63, %s3557_s4  ;;  %v831_v17 = vadd.f32 %v828_v13, %v827_v37  ;;  %v581_v4 = vadd.f32 %v578_v48, %v577_v33  ;;  %v904_v25 = vadd.f32 %v903_v34, %v901_v21  ;;  %v330_v6 = vpop.permute.xlu1 %329  ;;  %v4783_v37 = vld [vmem:[#allocation20_spill] sm:$0xff]  ;;  %v4787_v13 = vld [vmem:[#allocation31_spill] sm:$0xff] }
 0x1c3   :  { %v734_v23 = vadd.f32 %v733_v46, %v731_v32  ;;  %v1025_v14 = vmul.f32 %v4774_v18, %v4065_v45  ;;  %v926_v41 = vmul.f32 %v4775_v16, %v4065_v45  ;;  %v1026_v60 = vmul.f32 %v4776_v43, %v4061_v42  ;;  %v4784_v32 = vld [vmem:[#allocation9_spill] sm:$0xff]  ;;  %v4788_v46 = vld [vmem:[#allocation8_spill] sm:$0xff] }
 0x1c4   :  { %v927_v27 = vmul.f32 %v4777_v44, %v4061_v42  ;;  %v4198_v31 = vadd.f32 %v581_v4, %v579_v22  ;;  %v832_v28 = vadd.f32 %v831_v17, %v829_v10  ;;  %v1027_v58 = vmul.f32 %v4778_v56, %v4087_v15  ;;  %v334_v40 = vpop.permute.xlu0 %333  ;;  %v4789_v22 = vld [vmem:[#allocation10_spill] sm:$0xff] }
 0x1c5   :  { %v928_v62 = vmul.f32 %v4779_v57, %v4087_v15  ;;  %v1003_v7 = vadd.f32 %v1002_v1, %v1000_v8  ;;  %v1028_v12 = vmul.f32 %v4780_v29, %v4111_v9  ;;  %v1029_v52 = vadd.f32 %v1026_v60, %v1025_v14  ;;  %v4782_v1 = vld [vmem:[#allocation25_spill] sm:$0xff]  ;;  %v4791_v57 = vld [vmem:[#allocation22_spill] sm:$0xff] }
 0x1c6   :  { %807 = vrot.lane.b32.xlu1 %v805_v20, %s3556_s3  ;;  %637 = vrot.lane.b32.xlu0 %v635_v24, %s3557_s4  ;;  %v833_v35 = vadd.f32 %v832_v28, %v830_v19  ;;  %v4781_v24 = vld [vmem:[#allocation26_spill] sm:$0xff]  ;;  %v930_v36 = vadd.f32 %v927_v27, %v926_v41  ;;  %v336_v5 = vmul.f32 %v4782_v1, %v4065_v45  ;;  %v472_v49 = vpop.permute.xlu1 %471  ;;  %v4790_v19 = vmov 23  }
 0x1c7   :  { %v929_v47 = vmul.f32 %v4781_v24, %v4111_v9  ;;  %v1030_v63 = vadd.f32 %v1029_v52, %v1027_v58  ;;  %v337_v59 = vmul.f32 %v326_v38, %v4061_v42  ;;  %v338_v3 = vmul.f32 %v330_v6, %v4087_v15 }
 0x1c8   :  { %v931_v26 = vadd.f32 %v930_v36, %v928_v62  ;;  %v308_v20 = vmul.f32 %v4783_v37, %v4065_v45  ;;  %v309_v61 = vmul.f32 %v4786_v50, %v4061_v42  ;;  %v310_v55 = vmul.f32 %v4787_v13, %v4087_v15  ;;  %v4234_v41 = vpop.permute.xlu0 %859 }
 0x1c9   :  { %v1031_v2 = vadd.f32 %v1030_v63, %v1028_v12  ;;  %v340_v21 = vadd.f32 %v337_v59, %v336_v5  ;;  %v311_v54 = vmul.f32 %v4051_v53, %v4111_v9  ;;  %v339_v48 = vmul.f32 %v334_v40, %v4111_v9  ;;  %v4793_v12 = vld [vmem:[#allocation27_spill] sm:$0xff] }
 0x1ca   :  { %906 = vrot.lane.b32.xlu1 %v904_v25, %s3556_s3  ;;  %736 = vrot.lane.b32.xlu0 %v734_v23, %s3557_s4  ;;  %v932_v30 = vadd.f32 %v931_v26, %v929_v47  ;;  %v312_v33 = vadd.f32 %v309_v61, %v308_v20  ;;  %v666_v34 = vpop.permute.xlu1 %665  ;;  %v379_v62 = vmul.f32 %v4791_v57, %v4065_v45  ;;  %v444_v37 = vstv %s2700_s26 }
 0x1cb   :  { %v341_v10 = vadd.f32 %v340_v21, %v338_v3  ;;  %v480_v6 = vmul.f32 %v472_v49, %v4087_v15  ;;  %v677_v38 = vmul.f32 %v666_v34, %v4061_v42 }
 0x1cc   :  { %v313_v51 = vadd.f32 %v312_v33, %v310_v55  ;;  %v769_v60 = vpop.permute.xlu0 %768 }
 0x1cd   :  { %v342_v8 = vadd.f32 %v341_v10, %v339_v48  ;;  %v483_v5 = vadd.f32 %v4074_v39, %v480_v6 }
 0x1ce   :  { %1005 = vrot.lane.b32.xlu1 %v1003_v7, %s3556_s3  ;;  %835 = vrot.lane.b32.xlu0 %v833_v35, %s3557_s4  ;;  %v314_v11 = vadd.f32 %v313_v51, %v311_v54  ;;  %v377_v17 = vpop.permute.xlu1 %376  ;;  %v4792_v7 = vld [vmem:[#allocation23_spill] sm:$0xff]  ;;  %v381_v35 = vmul.f32 %v4793_v12, %v4087_v15  ;;  %v543_v54 = vstv %s4250_s27  ;;  %s3571_s27 = smov 32  }
 0x1cf   :  { %v380_v29 = vmul.f32 %v4792_v7, %v4061_v42  ;;  %v382_v47 = vmul.f32 %v377_v17, %v4111_v9 }
 0x1d0   :  { %v662_v27 = vpop.permute.xlu0 %661 }
 0x1d1   :  { %v383_v36 = vadd.f32 %v380_v29, %v379_v62  ;;  %v676_v3 = vmul.f32 %v662_v27, %v4065_v45  ;;  %v874_v62 = vmul.f32 %v4234_v41, %v4065_v45 }
 0x1d2   :  { %1033 = vrot.lane.b32.xlu1 %v1031_v2, %s3557_s4  ;;  %934 = vrot.lane.b32.xlu0 %v932_v30, %s3557_s4 }
 0x1d3   :  { %v761_v53 = vpop.permute.xlu1 %760  ;;  %v384_v63 = vadd.f32 %v383_v36, %v381_v35  ;;  %v680_v39 = vadd.f32 %v677_v38, %v676_v3 }
 0x1d4   :  { %v674_v56 = vpop.permute.xlu0 %673  ;;  %v775_v10 = vmul.f32 %v761_v53, %v4065_v45  ;;  %v642_v53 = vstv %s4255_s28 }
 0x1d5   :  { %v385_v1 = vadd.f32 %v384_v63, %v382_v47  ;;  %v741_v47 = vstv %s4263_s29 }
 0x1d6   :  { %271 = vperm.xlu1 %3524, %v4784_v32   ;;  %266 = vperm.xlu0 %3523, %v4785_v0  }
 0x1d7   :  { %v765_v4 = vpop.permute.xlu1 %764 }
 0x1d8   :  { %v967_v52 = vpop.permute.xlu0 %966  ;;  %v776_v61 = vmul.f32 %v765_v4, %v4061_v42 }
 0x1da   :  { %276 = vperm.xlu1 %3524, %v4788_v46   ;;  %281 = vperm.xlu0 %3523, %v4789_v22   ;;  %v779_v51 = vadd.f32 %v776_v61, %v775_v10 }
 0x1dc   :  { %v476_v25 = vpop.permute.xlu1 %475 }
 0x1dd   :  { %v481_v30 = vmul.f32 %v476_v25, %v4111_v9 }
 0x1de   :  { %316 = vrot.lane.b32.xlu1 %v314_v11, %s3556_s3  ;;  %344 = vrot.lane.b32.xlu0 %v342_v8, %s3557_s4  ;;  %v679_v11 = vmul.f32 %v674_v56, %v4111_v9 }
 0x1df   :  { %3525 = vset.pattern.permute.xlu0 %v4790_v19  ;;  %v484_v0 = vadd.f32 %v483_v5, %v481_v30  ;;  %v840_v5 = vstv %s4277_s0 }
 0x1e1   :  { %v670_v23 = vpop.permute.xlu1 %669 }
 0x1e2   :  { %v678_v21 = vmul.f32 %v670_v23, %v4087_v15 }
 0x1e4   :  { %v681_v48 = vadd.f32 %v680_v39, %v678_v21 }
 0x1e6   :  { %v864_v18 = vpop.permute.xlu1 %863  ;;  %v682_v56 = vadd.f32 %v681_v48, %v679_v11 }
 0x1e7   :  { %v875_v4 = vmul.f32 %v864_v18, %v4061_v42 }
 0x1e9   :  { %v878_v12 = vadd.f32 %v875_v4, %v874_v62 }
 0x1eb   :  { %v575_v14 = vpop.permute.xlu1 %574 }
 0x1ec   :  { %v580_v32 = vmul.f32 %v575_v14, %v4111_v9 }
 0x1ee   :  { %v583_v46 = vadd.f32 %v4198_v31, %v580_v32  ;;  %v777_v31 = vmul.f32 %v769_v60, %v4087_v15  ;;  %v975_v60 = vmul.f32 %v967_v52, %v4087_v15  ;;  %v939_v32 = vstv %s4291_s30 }
 0x1f0   :  { %v959_v16 = vpop.permute.xlu1 %958  ;;  %v780_v18 = vadd.f32 %v779_v51, %v777_v31 }
 0x1f1   :  { %v973_v25 = vmul.f32 %v959_v16, %v4065_v45 }
 0x1f4   :  { %v963_v43 = vpop.permute.xlu1 %962 }
 0x1f5   :  { %v974_v8 = vmul.f32 %v963_v43, %v4061_v42 }
 0x1f7   :  { %v977_v7 = vadd.f32 %v974_v8, %v973_v25 }
 0x1f9   :  { %v4236_v44 = vpop.permute.xlu1 %867 }
 0x1fa   :  { %v876_v16 = vmul.f32 %v4236_v44, %v4087_v15 }
 0x1fc   :  { %v879_v52 = vadd.f32 %v878_v12, %v876_v16 }
 0x1fe   :  { %v773_v28 = vpop.permute.xlu1 %772 }
 0x1ff   :  { %v778_v23 = vmul.f32 %v773_v28, %v4111_v9 }
 0x201   :  { %v781_v35 = vadd.f32 %v780_v18, %v778_v23 }
 0x203   :  { %v4238_v58 = vpop.permute.xlu1 %871 }
 0x204   :  { %v877_v44 = vmul.f32 %v4238_v58, %v4111_v9 }
 0x208   :  { %v4246_v24 = vpop.permute.xlu1 %970 }
 0x209   :  { %v976_v6 = vmul.f32 %v4246_v24, %v4111_v9  ;;  %v880_v24 = vadd.f32 %v879_v52, %v877_v44 }
 0x22c   :  { %v412_v26 = vpop.permute.xlu0 %411  ;;  %v511_v2 = vpop.permute.xlu1 %510 }
 0x22d   :  { %v414_v59 = vadd.f32 %v412_v26, %v385_v1  ;;  %v513_v13 = vadd.f32 %v511_v2, %v484_v0  ;;  %v978_v2 = vadd.f32 %v977_v7, %v975_v60  ;;  %v1060_v60 = vld [vmem:[%s4720_s5 + $0x18] sm:$0xff] }
 0x230   :  { %v440_v49 = vpop.permute.xlu0 %439  ;;  %v610_v20 = vpop.permute.xlu1 %609 }
 0x231   :  { %v442_v50 = vadd.f32 %v440_v49, %v414_v59  ;;  %v612_v19 = vadd.f32 %v610_v20, %v583_v46 }
 0x233   :  { %v445_v55 = vadd.f32 %v444_v37, %v442_v50  ;;  %v979_v37 = vadd.f32 %v978_v2, %v976_v6  ;;  %v1090_v6 = vand.u32 4294901760, %v1060_v60 }
 0x234   :  { %v539_v33 = vpop.permute.xlu0 %538  ;;  %v709_v40 = vpop.permute.xlu1 %708 }
 0x235   :  { %v4265_v34 = vmax.f32 %v445_v55, 0.0  ;;  %v541_v22 = vadd.f32 %v539_v33, %v513_v13  ;;  %v711_v28 = vadd.f32 %v709_v40, %v682_v56  ;;  %v1038_v55 = vstv %s2706_s12  ;;  %s3572_s12 = smov 48  }
 0x236   :  { %v4369_v52 = vsub.f32 %v1060_v60, %v1090_v6  ;;  %v1072_v60 = vld [vmem:[%s4720_s5 + $0x78] sm:$0xff] }
 0x237   :  { %v544_v17 = vadd.f32 %v543_v54, %v541_v22  ;;  %448 = vrot.lane.b32.xlu1 %v4265_v34, %s3556_s3 }
 0x238   :  { %v638_v14 = vpop.permute.xlu0 %637  ;;  %v808_v27 = vpop.permute.xlu1 %807 }
 0x239   :  { %v4279_v43 = vmax.f32 %v544_v17, 0.0  ;;  %v640_v57 = vadd.f32 %v638_v14, %v612_v19  ;;  %v810_v30 = vadd.f32 %v808_v27, %v781_v35  ;;  %v349_v27 = vstv %s348_s13 }
 0x23b   :  { %v643_v29 = vadd.f32 %v642_v53, %v640_v57  ;;  %452 = vrot.lane.b32.xlu1 %v4265_v34, %s3557_s4  ;;  %547 = vrot.lane.b32.xlu0 %v4279_v43, %s3556_s3 }
 0x23c   :  { %v737_v41 = vpop.permute.xlu0 %736  ;;  %v907_v36 = vpop.permute.xlu1 %906 }
 0x23d   :  { %v4297_v63 = vmax.f32 %v643_v29, 0.0  ;;  %v739_v26 = vadd.f32 %v737_v41, %v711_v28  ;;  %v909_v49 = vadd.f32 %v907_v36, %v880_v24  ;;  %v1059_v29 = vld [vmem:[%s4720_s5 + $0x10] sm:$0xff] }
 0x23e   :  { %v1087_v41 = vand.u32 4294901760, %v1059_v29 }
 0x23f   :  { %v742_v1 = vadd.f32 %v741_v47, %v739_v26  ;;  %551 = vrot.lane.b32.xlu1 %v4279_v43, %s3557_s4  ;;  %646 = vrot.lane.b32.xlu0 %v4297_v63, %s3556_s3 }
 0x240   :  { %v836_v58 = vpop.permute.xlu0 %835  ;;  %v1006_v38 = vpop.permute.xlu1 %1005  ;;  %v4365_v2 = vsub.f32 %v1059_v29, %v1087_v41  ;;  %v1071_v29 = vld [vmem:[%s4720_s5 + $0x70] sm:$0xff] }
 0x241   :  { %v4304_v59 = vmax.f32 %v742_v1, 0.0  ;;  %v838_v3 = vadd.f32 %v836_v58, %v810_v30  ;;  %v1008_v21 = vadd.f32 %v1006_v38, %v979_v37  ;;  %v1062_v30 = vld [vmem:[%s4720_s5 + $0x28] sm:$0xff]  ;;  %v4377_v1 = vpack.c.bf16 %v1090_v6, %v1087_v41 }
 0x242   :  { %v1096_v38 = vand.u32 4294901760, %v1062_v30  ;;  %v3230_v37 = vpack.c.bf16 %v4369_v52, %v4365_v2 }
 0x243   :  { %v841_v20 = vadd.f32 %v840_v5, %v838_v3  ;;  %650 = vrot.lane.b32.xlu1 %v4297_v63, %s3557_s4  ;;  %745 = vrot.lane.b32.xlu0 %v4304_v59, %s3556_s3 }
 0x244   :  { %v935_v0 = vpop.permute.xlu0 %934  ;;  %v1034_v50 = vpop.permute.xlu1 %1033 }
 0x245   :  { %v4311_v61 = vmax.f32 %v841_v20, 0.0  ;;  %v937_v39 = vadd.f32 %v935_v0, %v909_v49  ;;  %v1036_v13 = vadd.f32 %v1034_v50, %v1008_v21  ;;  %v4385_v21 = vsub.f32 %v1062_v30, %v1096_v38 }
 0x247   :  { %v940_v10 = vadd.f32 %v939_v32, %v937_v39  ;;  %749 = vrot.lane.b32.xlu1 %v4304_v59, %s3557_s4  ;;  %844 = vrot.lane.b32.xlu0 %v4311_v61, %s3556_s3  ;;  %v1039_v33 = vadd.f32 %v1038_v55, %v1036_v13  ;;  %v1064_v32 = vld [vmem:[%s4720_s5 + $0x38] sm:$0xff] }
 0x248   :  { %v1102_v55 = vand.u32 4294901760, %v1064_v32 }
 0x249   :  { %v4317_v54 = vmax.f32 %v940_v10, 0.0  ;;  %v4323_v40 = vmax.f32 %v1039_v33, 0.0 }
 0x24b   :  { %848 = vrot.lane.b32.xlu1 %v4311_v61, %s3557_s4  ;;  %943 = vrot.lane.b32.xlu0 %v4317_v54, %s3556_s3 }
 0x24f   :  { %947 = vrot.lane.b32.xlu1 %v4317_v54, %s3557_s4  ;;  %1042 = vrot.lane.b32.xlu0 %v4323_v40, %s3556_s3 }
 0x253   :  { %1046 = vrot.lane.b32.xlu0 %v4323_v40, %s3557_s4 }
 0x255   :  { %v267_v48 = vpop.permute.xlu0 %266  ;;  %v272_v46 = vpop.permute.xlu1 %271 }
 0x256   :  { %v284_v22 = vmul.f32 %v267_v48, %v4065_v45  ;;  %v285_v51 = vmul.f32 %v272_v46, %v4061_v42  ;;  %v3569_v42 = vmov 0.0|0.0   ;;  %v1057_v45 = vld [vmem:[%s4720_s5] sm:$0xff] }
 0x257   :  { %3226 = vmatprep.subr.bf16.mxu0 %v3569_v42  ;;  %3178 = vmatprep.subr.bf16.mxu1 %v3569_v42 }
 0x258   :  { %v288_v19 = vadd.f32 %v285_v51, %v284_v22  ;;  %v4403_v22 = vsub.f32 %v1064_v32, %v1102_v55  ;;  %v1066_v51 = vld [vmem:[%s4720_s5 + $0x48] sm:$0xff] }
 0x259   :  { %v282_v8 = vpop.permute.xlu0 %281  ;;  %v277_v11 = vpop.permute.xlu1 %276 }
 0x25a   :  { %v286_v17 = vmul.f32 %v277_v11, %v4087_v15  ;;  %v287_v53 = vmul.f32 %v282_v8, %v4111_v9  ;;  %v1058_v15 = vld [vmem:[%s4720_s5 + $0x8] sm:$0xff]  ;;  %v1081_v9 = vand.u32 4294901760, %v1057_v45 }
 0x25b   :  { %v1084_v7 = vand.u32 4294901760, %v1058_v15 }
 0x25c   :  { %v289_v4 = vadd.f32 %v288_v19, %v286_v17  ;;  %v4349_v16 = vsub.f32 %v1057_v45, %v1081_v9  ;;  %v1069_v45 = vld [vmem:[%s4720_s5 + $0x60] sm:$0xff] }
 0x25d   :  { %v317_v23 = vpop.permute.xlu1 %316  ;;  %v345_v31 = vpop.permute.xlu0 %344  ;;  %v4351_v28 = vsub.f32 %v1058_v15, %v1084_v7  ;;  %v4359_v12 = vpack.c.bf16 %v1084_v7, %v1081_v9  ;;  %v1070_v7 = vld [vmem:[%s4720_s5 + $0x68] sm:$0xff] }
 0x25e   :  { %v290_v25 = vadd.f32 %v289_v4, %v287_v53  ;;  %v1108_v53 = vand.u32 4294901760, %v1066_v51  ;;  %v1120_v41 = vand.u32 4294901760, %v1070_v7 }
 0x25f   :  { %v3227_v47 = vpack.c.bf16 %v4351_v28, %v4349_v16  ;;  %3180 = vmatpush3.bf16.msra.mxu1 %v4359_v12 }
 0x260   :  { %v319_v14 = vadd.f32 %v317_v23, %v290_v25  ;;  %3181 = vmatprep.subr.bf16.mxu1 %v3569_v42 }
 0x261   :  { %3228 = vmatpush3.bf16.msra.mxu0 %v3227_v47 }
 0x262   :  { %v347_v56 = vadd.f32 %v345_v31, %v319_v14  ;;  %3229 = vmatprep.subr.bf16.mxu0 %v3569_v42  ;;  %v4421_v31 = vsub.f32 %v1066_v51, %v1108_v53 }
 0x263   :  { %3183 = vmatpush3.bf16.msra.mxu1 %v4377_v1 }
 0x264   :  { %v350_v57 = vadd.f32 %v349_v27, %v347_v56  ;;  %3184 = vmatprep.subr.bf16.mxu1 %v3569_v42  ;;  %v1067_v27 = vld [vmem:[%s4720_s5 + $0x50] sm:$0xff]  ;;  %v1068_v56 = vld [vmem:[%s4720_s5 + $0x58] sm:$0xff] }
 0x265   :  { %3231 = vmatpush3.bf16.msra.mxu0 %v3230_v37  ;;  %v1111_v15 = vand.u32 4294901760, %v1067_v27  ;;  %v1114_v9 = vand.u32 4294901760, %v1068_v56 }
 0x266   :  { %v4335_v62 = vmax.f32 %v350_v57, 0.0  ;;  %3232 = vmatprep.subr.bf16.mxu0 %v3569_v42 }
 0x267   :  { %v4451_v6 = vsub.f32 %v1067_v27, %v1111_v15 }
 0x268   :  { %357 = vrot.lane.b32.xlu0 %v4335_v62, %s3557_s4  ;;  %353 = vrot.lane.b32.xlu1 %v4335_v62, %s3556_s3 }
 0x2a9   :  { %v449_v18 = vpop.permute.xlu1 %448 }
 0x2aa   :  { %v451_v35 = vmax.f32 %v4265_v34, %v449_v18  ;;  %v1061_v34 = vld [vmem:[%s4720_s5 + $0x20] sm:$0xff]  ;;  %v1117_v18 = vand.u32 4294901760, %v1069_v45 }
 0x2ab   :  { %v1093_v58 = vand.u32 4294901760, %v1061_v34 }
 0x2ac   :  { %v4456_v30 = vsub.f32 %v1069_v45, %v1117_v18 }
 0x2ad   :  { %v548_v36 = vpop.permute.xlu0 %547  ;;  %v453_v44 = vpop.permute.xlu1 %452  ;;  %v4383_v20 = vsub.f32 %v1061_v34, %v1093_v58  ;;  %v4394_v0 = vpack.c.bf16 %v1096_v38, %v1093_v58  ;;  %v1123_v34 = vand.u32 4294901760, %v1071_v29  ;;  %v4460_v58 = vpack.c.bf16 %v1114_v9, %v1111_v15 }
 0x2ae   :  { %v455_v26 = vmax.f32 %v451_v35, %v453_v44  ;;  %v550_v5 = vmax.f32 %v4279_v43, %v548_v36  ;;  %v1063_v43 = vld [vmem:[%s4720_s5 + $0x30] sm:$0xff]  ;;  %v4794_v36 = vmov 0.0   ;;  %v1126_v38 = vand.u32 4294901760, %v1072_v60 }
 0x2af   :  { %v3233_v39 = vpack.c.bf16 %v4385_v21, %v4383_v20  ;;  %v1099_v13 = vand.u32 4294901760, %v1063_v43  ;;  %3186 = vmatpush3.bf16.msra.mxu1 %v4394_v0  ;;  %2962 = vmatprep.mubr.msk.f32.mxu0 %vm3574_vm6, %v4794_v36  ;;  %v1202_v45 = vand.u32 4294901760, %v4383_v20 }
 0x2b0   :  { %457 = vrot.lane.b32.xlu1 %v455_v26, %s3570_s2  ;;  %3187 = vmatprep.subr.bf16.mxu1 %v3569_v42  ;;  %v4453_v26 = vsub.f32 %v1068_v56, %v1114_v9  ;;  %s3576_s2 = smov 96  }
 0x2b1   :  { %v647_v24 = vpop.permute.xlu0 %646  ;;  %v552_v3 = vpop.permute.xlu1 %551  ;;  %v4401_v46 = vsub.f32 %v1063_v43, %v1099_v13  ;;  %3234 = vmatpush3.bf16.msra.mxu0 %v3233_v39  ;;  %v4412_v8 = vpack.c.bf16 %v1102_v55, %v1099_v13  ;;  %v4467_v43 = vpack.c.bf16 %v1120_v41, %v1117_v18  ;;  %2892 = vmatprep.mubr.msk.f32.mxu1 %vm3574_vm6, %v4794_v36 }
 0x2b2   :  { %v554_v49 = vmax.f32 %v550_v5, %v552_v3  ;;  %v649_v50 = vmax.f32 %v4297_v63, %v647_v24  ;;  %v1065_v63 = vld [vmem:[%s4720_s5 + $0x40] sm:$0xff]  ;;  %3235 = vmatprep.subr.bf16.mxu0 %v3569_v42  ;;  %v4458_v5 = vsub.f32 %v1070_v7, %v1120_v41  ;;  %s3575_s5 = smov 80   ;;  %v3242_v3 = vpack.c.bf16 %v4453_v26, %v4451_v6 }
 0x2b3   :  { %v3236_v19 = vpack.c.bf16 %v4403_v22, %v4401_v46  ;;  %v1105_v17 = vand.u32 4294901760, %v1065_v63  ;;  %3189 = vmatpush3.bf16.msra.mxu1 %v4412_v8  ;;  %v4476_v39 = vsub.f32 %v1072_v60, %v1126_v38  ;;  %v1216_v18 = vand.u32 4294901760, %v4401_v46 }
 0x2b4   :  { %556 = vrot.lane.b32.xlu0 %v554_v49, %s3571_s27  ;;  %3190 = vmatprep.subr.bf16.mxu1 %v3569_v42 }
 0x2b5   :  { %v746_v10 = vpop.permute.xlu0 %745  ;;  %v651_v33 = vpop.permute.xlu1 %650  ;;  %v4419_v14 = vsub.f32 %v1065_v63, %v1105_v17  ;;  %3237 = vmatpush3.bf16.msra.mxu0 %v3236_v19  ;;  %v4431_v57 = vpack.c.bf16 %v1108_v53, %v1105_v17  ;;  %v1181_v63 = vand.u32 4294901760, %v4351_v28  ;;  %v1188_v53 = vand.u32 4294901760, %v4365_v2 }
 0x2b6   :  { %v653_v48 = vmax.f32 %v649_v50, %v651_v33  ;;  %v748_v11 = vmax.f32 %v4304_v59, %v746_v10  ;;  %3238 = vmatprep.subr.bf16.mxu0 %v3569_v42  ;;  %v4474_v50 = vsub.f32 %v1071_v29, %v1123_v34  ;;  %v1217_v60 = vsub.f32 %v4401_v46, %v1216_v18 }
 0x2b7   :  { %3192 = vmatpush3.bf16.msra.mxu1 %v4431_v57 }
 0x2b8   :  { %655 = vrot.lane.b32.xlu1 %v653_v48, %s3572_s12  ;;  %3193 = vmatprep.subr.bf16.mxu1 %v3569_v42  ;;  %v3248_v33 = vpack.c.bf16 %v4476_v39, %v4474_v50  ;;  %v4485_v48 = vpack.c.bf16 %v1126_v38, %v1123_v34  ;;  %v1237_v34 = vand.u32 4294901760, %v4421_v31 }
 0x2b9   :  { %v845_v4 = vpop.permute.xlu0 %844  ;;  %v750_v25 = vpop.permute.xlu1 %749 }
 0x2ba   :  { %v752_v23 = vmax.f32 %v748_v11, %v750_v25  ;;  %v847_v59 = vmax.f32 %v4311_v61, %v845_v4  ;;  %v3239_v61 = vpack.c.bf16 %v4421_v31, %v4419_v14  ;;  %v1182_v11 = vsub.f32 %v4351_v28, %v1181_v63 }
 0x2bb   :  { %3195 = vmatpush3.bf16.msra.mxu1 %v4460_v58  ;;  %v1195_v4 = vand.u32 4294901760, %v4369_v52  ;;  %v1203_v28 = vsub.f32 %v4383_v20, %v1202_v45  ;;  %v1218_v20 = vand.u32 4294901760, %v1217_v60 }
 0x2bc   :  { %754 = vrot.lane.b32.xlu0 %v752_v23, %s3573_s18  ;;  %3240 = vmatpush3.bf16.msra.mxu0 %v3239_v61  ;;  %v1183_v17 = vand.u32 4294901760, %v1182_v11  ;;  %v1189_v23 = vsub.f32 %v4365_v2, %v1188_v53  ;;  %v1223_v2 = vand.u32 4294901760, %v4403_v22 }
 0x2bd   :  { %v944_v35 = vpop.permute.xlu0 %943  ;;  %v849_v47 = vpop.permute.xlu1 %848  ;;  %3241 = vmatprep.subr.bf16.mxu0 %v3569_v42  ;;  %3196 = vmatprep.subr.bf16.mxu1 %v3569_v42  ;;  %v1204_v9 = vand.u32 4294901760, %v1203_v28  ;;  %v4540_v28 = vpack.c.bf16 %v1195_v4, %v1188_v53 }
 0x2be   :  { %v851_v44 = vmax.f32 %v847_v59, %v849_v47  ;;  %v946_v24 = vmax.f32 %v4317_v54, %v944_v35  ;;  %v3245_v54 = vpack.c.bf16 %v4458_v5, %v4456_v30  ;;  %v1196_v59 = vsub.f32 %v4369_v52, %v1195_v4 }
 0x2bf   :  { %3198 = vmatpush3.bf16.msra.mxu1 %v4467_v43  ;;  %v1190_v27 = vand.u32 4294901760, %v1189_v23  ;;  %v1224_v35 = vsub.f32 %v4403_v22, %v1223_v2 }
 0x2c0   :  { %853 = vrot.lane.b32.xlu1 %v851_v44, %s3575_s5  ;;  %3243 = vmatpush3.bf16.msra.mxu0 %v3242_v3  ;;  %v1197_v56 = vand.u32 4294901760, %v1196_v59 }
 0x2c1   :  { %v1043_v37 = vpop.permute.xlu0 %1042  ;;  %v948_v49 = vpop.permute.xlu1 %947  ;;  %3244 = vmatprep.subr.bf16.mxu0 %v3569_v42  ;;  %3199 = vmatprep.subr.bf16.mxu1 %v3569_v42  ;;  %v1225_v44 = vand.u32 4294901760, %v1224_v35 }
 0x2c2   :  { %v950_v32 = vmax.f32 %v946_v24, %v948_v49  ;;  %v1045_v13 = vmax.f32 %v4323_v40, %v1043_v37  ;;  %v1174_v40 = vand.u32 4294901760, %v4349_v16  ;;  %v4502_v61 = vpack.c.bf16 %v1197_v56, %v1190_v27 }
 0x2c3   :  { %3201 = vmatpush3.bf16.msra.mxu1 %v4485_v48  ;;  %v4515_v24 = vpack.c.bf16 %v1225_v44, %v1218_v20  ;;  %v1238_v37 = vsub.f32 %v4421_v31, %v1237_v34  ;;  %v1251_v49 = vand.u32 4294901760, %v4453_v26  ;;  %v1265_v31 = vand.u32 4294901760, %v4458_v5 }
 0x2c4   :  { %952 = vrot.lane.b32.xlu0 %v950_v32, %s3576_s2  ;;  %3246 = vmatpush3.bf16.msra.mxu0 %v3245_v54  ;;  %v1175_v51 = vsub.f32 %v4349_v16, %v1174_v40  ;;  %v1209_v16 = vand.u32 4294901760, %v4385_v21 }
 0x2c5   :  { %v1047_v55 = vpop.permute.xlu0 %1046  ;;  %3247 = vmatprep.subr.bf16.mxu0 %v3569_v42  ;;  %3202 = vmatprep.subr.bf16.mxu1 %v3569_v42  ;;  %v1239_v22 = vand.u32 4294901760, %v1238_v37  ;;  %v1266_v11 = vsub.f32 %v4458_v5, %v1265_v31 }
 0x2c6   :  { %v1049_v10 = vmax.f32 %v1045_v13, %v1047_v55  ;;  %v1176_v19 = vand.u32 4294901760, %v1175_v51  ;;  %v1210_v15 = vsub.f32 %v4385_v21, %v1209_v16  ;;  %v1230_v21 = vand.u32 4294901760, %v4419_v14 }
 0x2c7   :  { %v1252_v13 = vsub.f32 %v4453_v26, %v1251_v49  ;;  %v1267_v23 = vand.u32 4294901760, %v1266_v11  ;;  %v1279_v26 = vand.u32 4294901760, %v4476_v39 }
 0x2c8   :  { %1051 = vrot.lane.b32.xlu1 %v1049_v10, %s3577_s25  ;;  %3249 = vmatpush3.bf16.msra.mxu0 %v3248_v33  ;;  %v4496_v25 = vpack.c.bf16 %v1183_v17, %v1176_v19  ;;  %v1211_v7 = vand.u32 4294901760, %v1210_v15  ;;  %v1231_v3 = vsub.f32 %v4419_v14, %v1230_v21  ;;  %v1258_v14 = vand.u32 4294901760, %v4456_v30 }
 0x2c9   :  { %3250 = vmatprep.subr.bf16.mxu0 %v3569_v42  ;;  %v1253_v10 = vand.u32 4294901760, %v1252_v13  ;;  %v4532_v19 = vpack.c.bf16 %v1181_v63, %v1174_v40  ;;  %v1280_v56 = vsub.f32 %v4476_v39, %v1279_v26  ;;  %v4546_v40 = vpack.c.bf16 %v1223_v2, %v1216_v18 }
 0x2ca   :  { %v4508_v52 = vpack.c.bf16 %v1211_v7, %v1204_v9  ;;  %v1232_v46 = vand.u32 4294901760, %v1231_v3  ;;  %v1259_v51 = vsub.f32 %v4456_v30, %v1258_v14  ;;  %v4542_v9 = vpack.c.bf16 %v1209_v16, %v1202_v45 }
 0x2cb   :  { %v1281_v30 = vand.u32 4294901760, %v1280_v56  ;;  %v4548_v63 = vpack.c.bf16 %v1237_v34, %v1230_v21 }
 0x2cc   :  { %v4522_v32 = vpack.c.bf16 %v1239_v22, %v1232_v46  ;;  %v1260_v17 = vand.u32 4294901760, %v1259_v51 }
 0x2ce   :  { %v4536_v59 = vpack.c.bf16 %v1267_v23, %v1260_v17 }
 0x2da   :  { %v354_v29 = vpop.permute.xlu1 %353  ;;  %v358_v41 = vpop.permute.xlu0 %357 }
 0x2db   :  { %v356_v47 = vmax.f32 %v4335_v62, %v354_v29  ;;  %v1244_v62 = vand.u32 4294901760, %v4451_v6  ;;  %v4552_v29 = vpack.c.bf16 %v1265_v31, %v1258_v14 }
 0x2dd   :  { %v360_v38 = vmax.f32 %v356_v47, %v358_v41  ;;  %v1245_v54 = vsub.f32 %v4451_v6, %v1244_v62  ;;  %v1272_v6 = vand.u32 4294901760, %v4474_v50  ;;  %v4550_v7 = vpack.c.bf16 %v1251_v49, %v1244_v62 }
 0x2df   :  { %362 = vst.msk [vmem:[#allocation3] sm:$0xff] %vm361_vm7, %v360_v38  ;;  %v1246_v55 = vand.u32 4294901760, %v1245_v54  ;;  %v1273_v27 = vsub.f32 %v4474_v50, %v1272_v6  ;;  %v4554_v60 = vpack.c.bf16 %v1279_v26, %v1272_v6  ;;  %v2707_v6 = vld [vmem:[%s4721_s6] ss:$0 sm:$0xff] }
 0x2e1   :  { %v4528_v33 = vpack.c.bf16 %v1253_v10, %v1246_v55  ;;  %v1274_v15 = vand.u32 4294901760, %v1273_v27 }
 0x2e3   :  { %v4544_v5 = vpack.c.bf16 %v1281_v30, %v1274_v15 }
 0x322   :  { %v458_v50 = vpop.permute.xlu1 %457 }
 0x323   :  { %461 = vst.msk [vmem:[#allocation3] sm:$0xff] %vm460_vm8, %v458_v50 }
 0x326   :  { %v557_v39 = vpop.permute.xlu0 %556 }
 0x327   :  { %560 = vst.msk [vmem:[#allocation3] sm:$0xff] %vm559_vm9, %v557_v39 }
 0x32a   :  { %v656_v53 = vpop.permute.xlu1 %655 }
 0x32b   :  { %659 = vst.msk [vmem:[#allocation3] sm:$0xff] %vm658_vm10, %v656_v53 }
 0x32e   :  { %v755_v4 = vpop.permute.xlu0 %754 }
 0x32f   :  { %758 = vst.msk [vmem:[#allocation3] sm:$0xff] %vm757_vm11, %v755_v4 }
 0x332   :  { %v854_v45 = vpop.permute.xlu1 %853 }
 0x333   :  { %857 = vst.msk [vmem:[#allocation3] sm:$0xff] %vm856_vm12, %v854_v45 }
 0x336   :  { %v953_v16 = vpop.permute.xlu0 %952 }
 0x337   :  { %956 = vst.msk [vmem:[#allocation3] sm:$0xff] %vm955_vm13, %v953_v16 }
 0x33a   :  { %v1052_v18 = vpop.permute.xlu1 %1051 }
 0x33b   :  { %1055 = vst.msk [vmem:[#allocation3] sm:$0xff] %vm1054_vm14, %v1052_v18 }
 0x342   :  { %v1056_v2 = vld [vmem:[#allocation3] sm:$0xff] }
 0x343   :  { %v4556_v35 = vand.u32 4294901760, %v1056_v2 }
 0x345   :  { %v1162_v47 = vsub.f32 %v1056_v2, %v4556_v35 }
 0x347   :  { %2963 = vmatmul.mubr.f32.vlgmr.msra.gmra.mrb[0].mxu0 %v1162_v47  ;;  %v1163_v41 = vand.u32 4294901760, %v1162_v47 }
 0x348   :  { %3252 = vmatpush3.bf16.msra.mxu0 %v4359_v12  ;;  %2997 = vmatprep.mubr.msk.f32.mxu0 %vm3574_vm6, %v4794_v36 }
 0x349   :  { %3253 = vmatprep.subr.bf16.mxu0 %v3569_v42  ;;  %v1164_v20 = vsub.f32 %v1162_v47, %v1163_v41 }
 0x34b   :  { %v1165_v44 = vand.u32 4294901760, %v1164_v20 }
 0x34c   :  { %3255 = vmatpush3.bf16.msra.mxu0 %v4377_v1 }
 0x34d   :  { %2893 = vmatmul.mubr.f32.vlgmr.msra.gmra.mrb[0].mxu1 %v1165_v44  ;;  %3256 = vmatprep.subr.bf16.mxu0 %v3569_v42 }
 0x34e   :  { %3204 = vmatpush3.bf16.msra.mxu1 %v4496_v25  ;;  %2927 = vmatprep.mubr.msk.f32.mxu1 %vm3574_vm6, %v4794_v36 }
 0x34f   :  { %3205 = vmatprep.subr.bf16.mxu1 %v3569_v42 }
 0x350   :  { %3258 = vmatpush3.bf16.msra.mxu0 %v4394_v0 }
 0x351   :  { %3259 = vmatprep.subr.bf16.mxu0 %v3569_v42 }
 0x352   :  { %3207 = vmatpush3.bf16.msra.mxu1 %v4502_v61 }
 0x353   :  { %3208 = vmatprep.subr.bf16.mxu1 %v3569_v42 }
 0x354   :  { %3261 = vmatpush3.bf16.msra.mxu0 %v4412_v8 }
 0x355   :  { %3262 = vmatprep.subr.bf16.mxu0 %v3569_v42 }
 0x356   :  { %3210 = vmatpush3.bf16.msra.mxu1 %v4508_v52 }
 0x357   :  { %3211 = vmatprep.subr.bf16.mxu1 %v3569_v42 }
 0x358   :  { %3264 = vmatpush3.bf16.msra.mxu0 %v4431_v57 }
 0x359   :  { %3265 = vmatprep.subr.bf16.mxu0 %v3569_v42 }
 0x35a   :  { %3213 = vmatpush3.bf16.msra.mxu1 %v4515_v24 }
 0x35b   :  { %3214 = vmatprep.subr.bf16.mxu1 %v3569_v42 }
 0x35c   :  { %3267 = vmatpush3.bf16.msra.mxu0 %v4460_v58 }
 0x35d   :  { %3268 = vmatprep.subr.bf16.mxu0 %v3569_v42 }
 0x35e   :  { %3216 = vmatpush3.bf16.msra.mxu1 %v4522_v32 }
 0x35f   :  { %3217 = vmatprep.subr.bf16.mxu1 %v3569_v42 }
 0x360   :  { %3270 = vmatpush3.bf16.msra.mxu0 %v4467_v43 }
 0x361   :  { %3271 = vmatprep.subr.bf16.mxu0 %v3569_v42 }
 0x362   :  { %3219 = vmatpush3.bf16.msra.mxu1 %v4528_v33 }
 0x363   :  { %3220 = vmatprep.subr.bf16.mxu1 %v3569_v42 }
 0x364   :  { %3273 = vmatpush3.bf16.msra.mxu0 %v4485_v48 }
 0x365   :  { %3274 = vmatprep.subr.bf16.mxu0 %v3569_v42 }
 0x366   :  { %3222 = vmatpush3.bf16.msra.mxu1 %v4536_v59 }
 0x367   :  { %2998 = vmatmul.mubr.f32.vlgmr.msra.gmra.mrb[0].mxu0 %v1163_v41  ;;  %3223 = vmatprep.subr.bf16.mxu1 %v3569_v42 }
 0x368   :  { %3276 = vmatpush3.bf16.msra.mxu0 %v4532_v19  ;;  %3032 = vmatprep.mubr.msk.f32.mxu0 %vm3574_vm6, %v4794_v36 }
 0x369   :  { %3277 = vmatprep.subr.bf16.mxu0 %v3569_v42 }
 0x36a   :  { %3225 = vmatpush3.bf16.msra.mxu1 %v4544_v5 }
 0x36b   :  { %3322 = vmatprep.subr.bf16.mxu1 %v3569_v42 }
 0x36c   :  { %3279 = vmatpush3.bf16.msra.mxu0 %v4540_v28 }
 0x36d   :  { %2928 = vmatmul.mubr.f32.vlgmr.msra.gmra.mrb[0].mxu1 %v4556_v35  ;;  %3280 = vmatprep.subr.bf16.mxu0 %v3569_v42 }
 0x36e   :  { %3078 = vmatprep.mubr.msk.f32.mxu1 %vm3574_vm6, %v4794_v36 }
 0x370   :  { %3282 = vmatpush3.bf16.msra.mxu0 %v4542_v9 }
 0x371   :  { %3283 = vmatprep.subr.bf16.mxu0 %v3569_v42 }
 0x374   :  { %3285 = vmatpush3.bf16.msra.mxu0 %v4546_v40 }
 0x375   :  { %3286 = vmatprep.subr.bf16.mxu0 %v3569_v42 }
 0x378   :  { %3288 = vmatpush3.bf16.msra.mxu0 %v4548_v63 }
 0x379   :  { %3289 = vmatprep.subr.bf16.mxu0 %v3569_v42 }
 0x37c   :  { %3291 = vmatpush3.bf16.msra.mxu0 %v4550_v7  ;;  %v2223_v7 = vld [vmem:[%s4724_s9] sm:$0xff] }
 0x37d   :  { %3292 = vmatprep.subr.bf16.mxu0 %v3569_v42 }
 0x380   :  { %3294 = vmatpush3.bf16.msra.mxu0 %v4552_v29  ;;  %v2224_v29 = vld [vmem:[%s4724_s9 + $0x8] sm:$0xff] }
 0x381   :  { %3295 = vmatprep.subr.bf16.mxu0 %v3569_v42  ;;  %v2239_v50 = vand.u32 4294901760, %v2224_v29 }
 0x383   :  { %v2321_v53 = vsub.f32 %v2224_v29, %v2239_v50 }
 0x384   :  { %3297 = vmatpush3.bf16.msra.mxu0 %v4554_v60  ;;  %v2236_v60 = vand.u32 4294901760, %v2223_v7 }
 0x385   :  { %3298 = vmatprep.subr.bf16.mxu0 %v3569_v42  ;;  %v2322_v16 = vand.u32 4294901760, %v2321_v53 }
 0x386   :  { %v2314_v39 = vsub.f32 %v2223_v7, %v2236_v60  ;;  %v3359_v4 = vpack.c.bf16 %v2239_v50, %v2236_v60 }
 0x387   :  { %3033 = vmatmul.mubr.f32.vlgmr.msra.gmra.mrb[0].mxu0 %v4556_v35 }
 0x388   :  { %3300 = vmatpush3.bf16.msra.mxu0 %v4359_v12  ;;  %3067 = vmatprep.mubr.msk.f32.mxu0 %vm3574_vm6, %v4794_v36  ;;  %v1722_v12 = vld [vmem:[%s4722_s7] sm:$0xff]  ;;  %v2315_v45 = vand.u32 4294901760, %v2314_v39  ;;  %v3365_v18 = vpack.c.bf16 %v2321_v53, %v2314_v39 }
 0x389   :  { %3301 = vmatprep.subr.bf16.mxu0 %v3569_v42 }
 0x38a   :  { %v2316_v2 = vsub.f32 %v2314_v39, %v2315_v45  ;;  %v3371_v44 = vpack.c.bf16 %v2322_v16, %v2315_v45 }
 0x38c   :  { %3303 = vmatpush3.bf16.msra.mxu0 %v4377_v1  ;;  %v1723_v1 = vld [vmem:[%s4722_s7 + $0x8] sm:$0xff]  ;;  %v2317_v47 = vand.u32 4294901760, %v2316_v2 }
 0x38d   :  { %3304 = vmatprep.subr.bf16.mxu0 %v3569_v42 }
 0x390   :  { %3306 = vmatpush3.bf16.msra.mxu0 %v4394_v0  ;;  %v1724_v0 = vld [vmem:[%s4722_s7 + $0x10] sm:$0xff] }
 0x391   :  { %3307 = vmatprep.subr.bf16.mxu0 %v3569_v42 }
 0x394   :  { %3309 = vmatpush3.bf16.msra.mxu0 %v4412_v8  ;;  %v1738_v8 = vand.u32 4294901760, %v1722_v12 }
 0x395   :  { %3310 = vmatprep.subr.bf16.mxu0 %v3569_v42 }
 0x396   :  { %v1818_v61 = vsub.f32 %v1722_v12, %v1738_v8  ;;  %v2708_v12 = vld [vmem:[%s4723_s8] ss:$0 sm:$0xff] }
 0x398   :  { %3312 = vmatpush3.bf16.msra.mxu0 %v4431_v57  ;;  %v1741_v57 = vand.u32 4294901760, %v1723_v1  ;;  %v1819_v24 = vand.u32 4294901760, %v1818_v61 }
 0x399   :  { %3313 = vmatprep.subr.bf16.mxu0 %v3569_v42 }
 0x39a   :  { %v4650_v25 = vpack.c.bf16 %v1741_v57, %v1738_v8  ;;  %v1825_v52 = vsub.f32 %v1723_v1, %v1741_v57  ;;  %v1820_v37 = vsub.f32 %v1818_v61, %v1819_v24 }
 0x39c   :  { %3315 = vmatpush3.bf16.msra.mxu0 %v4460_v58  ;;  %v1725_v58 = vld [vmem:[%s4722_s7 + $0x18] sm:$0xff]  ;;  %3324 = vmatpush3.bf16.msra.mxu1 %v4650_v25  ;;  %v1826_v3 = vand.u32 4294901760, %v1825_v52  ;;  %v1821_v49 = vand.u32 4294901760, %v1820_v37  ;;  %v3335_v33 = vpack.c.bf16 %v1825_v52, %v1818_v61 }
 0x39d   :  { %3316 = vmatprep.subr.bf16.mxu0 %v3569_v42  ;;  %3325 = vmatprep.subr.bf16.mxu1 %v3569_v42 }
 0x39e   :  { %v1827_v46 = vsub.f32 %v1825_v52, %v1826_v3  ;;  %v3347_v11 = vpack.c.bf16 %v1826_v3, %v1819_v24 }
 0x3a0   :  { %3318 = vmatpush3.bf16.msra.mxu0 %v4467_v43  ;;  %v1744_v43 = vand.u32 4294901760, %v1724_v0  ;;  %v1828_v32 = vand.u32 4294901760, %v1827_v46 }
 0x3a1   :  { %3319 = vmatprep.subr.bf16.mxu0 %v3569_v42 }
 0x3a2   :  { %v1832_v21 = vsub.f32 %v1724_v0, %v1744_v43  ;;  %v3329_v55 = vpack.c.bf16 %v1828_v32, %v1821_v49 }
 0x3a4   :  { %3321 = vmatpush3.bf16.msra.mxu0 %v4485_v48  ;;  %v1747_v48 = vand.u32 4294901760, %v1725_v58  ;;  %v1833_v22 = vand.u32 4294901760, %v1832_v21 }
 0x3a5   :  { %3358 = vmatprep.subr.bf16.mxu0 %v3569_v42 }
 0x3a6   :  { %v1839_v34 = vsub.f32 %v1725_v58, %v1747_v48  ;;  %v4653_v38 = vpack.c.bf16 %v1747_v48, %v1744_v43  ;;  %v1834_v54 = vsub.f32 %v1832_v21, %v1833_v22 }
 0x3a7   :  { %3068 = vmatmul.mubr.f32.vlgmr.msra.gmra.mrb[0].mxu0 %v4556_v35  ;;  %v2323_v35 = vsub.f32 %v2321_v53, %v2322_v16 }
 0x3a8   :  { %3140 = vmatprep.mubr.msk.f32.mxu0 %vm3574_vm6, %v4794_v36  ;;  %v1840_v62 = vand.u32 4294901760, %v1839_v34  ;;  %3327 = vmatpush3.bf16.msra.mxu1 %v4653_v38  ;;  %v1835_v10 = vand.u32 4294901760, %v1834_v54  ;;  %v3338_v51 = vpack.c.bf16 %v1839_v34, %v1832_v21 }
 0x3a9   :  { %3328 = vmatprep.subr.bf16.mxu1 %v3569_v42  ;;  %3360 = vmatpush3.bf16.msra.mxu0 %v3359_v4  ;;  %v2324_v41 = vand.u32 4294901760, %v2323_v35 }
 0x3aa   :  { %v1841_v13 = vsub.f32 %v1839_v34, %v1840_v62  ;;  %v3350_v19 = vpack.c.bf16 %v1840_v62, %v1833_v22 }
 0x3ab   :  { %v3362_v20 = vpack.c.bf16 %v2324_v41, %v2317_v47 }
 0x3ac   :  { %v1842_v14 = vand.u32 4294901760, %v1841_v13 }
 0x3ae   :  { %v3332_v31 = vpack.c.bf16 %v1842_v14, %v1835_v10 }
 0x440   :  { %v1318_v17 = vpop.f32.mrb[0].mxu1 }
 0x441   :  { %v2929_v23 = vpop.f32.mrb[1].mxu1  ;;  %v3376_v26 = vadd.f32 %v2707_v6, %v1318_v17 }
 0x47a   :  { %v1717_v59 = vpop.f32.mrb[0].mxu0 }
 0x47b   :  { %v3377_v27 = vadd.f32 %v3376_v26, %v1717_v59  ;;  %v3069_v56 = vpop.f32.mrb[1].mxu0 }
 0x47d   :  { %v1721_v28 = vmax.f32 %v3377_v27, 0.0 }
 0x47f   :  { %v1735_v15 = vsel %vm1733_vm15, %v1721_v28, 0 }
 0x480   :  { %v1806_v30 = vand.u32 4294901760, %v1735_v15 }
 0x482   :  { %v1807_v9 = vsub.f32 %v1735_v15, %v1806_v30 }
 0x484   :  { %v1808_v5 = vand.u32 4294901760, %v1807_v9 }
 0x486   :  { %v1809_v40 = vsub.f32 %v1807_v9, %v1808_v5 }
 0x488   :  { %v1810_v63 = vand.u32 4294901760, %v1809_v40 }
 0x48a   :  { %3079 = vmatmul.mubr.f32.vlgmr.msra.gmra.mrb[2].mxu1 %v1810_v63 }
 0x48b   :  { %3330 = vmatpush3.bf16.msra.mxu1 %v3329_v55  ;;  %3089 = vmatprep.mubr.msk.f32.mxu1 %vm3574_vm6, %v4794_v36 }
 0x48c   :  { %3331 = vmatprep.subr.bf16.mxu1 %v3569_v42 }
 0x48f   :  { %3333 = vmatpush3.bf16.msra.mxu1 %v3332_v31 }
 0x490   :  { %3334 = vmatprep.subr.bf16.mxu1 %v3569_v42 }
 0x492   :  { %3090 = vmatmul.mubr.f32.vlgmr.msra.gmra.mrb[2].mxu1 %v1806_v30 }
 0x493   :  { %3336 = vmatpush3.bf16.msra.mxu1 %v3335_v33  ;;  %3100 = vmatprep.mubr.msk.f32.mxu1 %vm3574_vm6, %v4794_v36 }
 0x494   :  { %3337 = vmatprep.subr.bf16.mxu1 %v3569_v42 }
 0x497   :  { %3339 = vmatpush3.bf16.msra.mxu1 %v3338_v51 }
 0x498   :  { %3340 = vmatprep.subr.bf16.mxu1 %v3569_v42 }
 0x49a   :  { %3101 = vmatmul.mubr.f32.vlgmr.msra.gmra.mrb[2].mxu1 %v1807_v9 }
 0x49b   :  { %3342 = vmatpush3.bf16.msra.mxu1 %v4650_v25  ;;  %3111 = vmatprep.mubr.msk.f32.mxu1 %vm3574_vm6, %v4794_v36 }
 0x49c   :  { %3343 = vmatprep.subr.bf16.mxu1 %v3569_v42 }
 0x49f   :  { %3345 = vmatpush3.bf16.msra.mxu1 %v4653_v38 }
 0x4a0   :  { %3346 = vmatprep.subr.bf16.mxu1 %v3569_v42 }
 0x4a2   :  { %3112 = vmatmul.mubr.f32.vlgmr.msra.gmra.mrb[2].mxu1 %v1808_v5 }
 0x4a3   :  { %3348 = vmatpush3.bf16.msra.mxu1 %v3347_v11  ;;  %3122 = vmatprep.mubr.msk.f32.mxu1 %vm3574_vm6, %v4794_v36 }
 0x4a4   :  { %3349 = vmatprep.subr.bf16.mxu1 %v3569_v42 }
 0x4a7   :  { %3351 = vmatpush3.bf16.msra.mxu1 %v3350_v19 }
 0x4a8   :  { %3352 = vmatprep.subr.bf16.mxu1 %v3569_v42 }
 0x4aa   :  { %3123 = vmatmul.mubr.f32.vlgmr.msra.gmra.mrb[2].mxu1 %v1806_v30 }
 0x4ab   :  { %3354 = vmatpush3.bf16.msra.mxu1 %v4650_v25  ;;  %3133 = vmatprep.mubr.msk.f32.mxu1 %vm3574_vm6, %v4794_v36 }
 0x4ac   :  { %3355 = vmatprep.subr.bf16.mxu1 %v3569_v42 }
 0x4af   :  { %3357 = vmatpush3.bf16.msra.mxu1 %v4653_v38  ;;  %v2709_v38 = vld [vmem:[%s4725_s10] ss:$0 sm:$0xff] }
 0x4b0   :  { %3361 = vmatprep.subr.bf16.mxu1 %v3569_v42 }
 0x4b2   :  { %3134 = vmatmul.mubr.f32.vlgmr.msra.gmra.mrb[2].mxu1 %v1806_v30 }
 0x4b3   :  { %3147 = vmatprep.mubr.msk.f32.mxu1 %vm3574_vm6, %v4794_v36  ;;  %3363 = vmatpush3.bf16.msra.mxu1 %v3362_v20 }
 0x4b4   :  { %3364 = vmatprep.subr.bf16.mxu1 %v3569_v42 }
 0x585   :  { %v2218_v1 = vpop.f32.mrb[2].mxu1 }
 0x586   :  { %v3378_v0 = vadd.f32 %v2708_v12, %v2218_v1  ;;  %v3135_v8 = vpop.f32.mrb[3].mxu1 }
 0x588   :  { %v2222_v57 = vmax.f32 %v3378_v0, 0.0 }
 0x58a   :  { %v2233_v58 = vsel %vm361_vm7, %v2222_v57, 0 }
 0x58b   :  { %v2302_v43 = vand.u32 4294901760, %v2233_v58 }
 0x58d   :  { %v2303_v48 = vsub.f32 %v2233_v58, %v2302_v43  ;;  %3148 = vmatmul.mubr.f32.vlgmr.msra.gmra.mrb[4].mxu1 %v2302_v43 }
 0x58e   :  { %3366 = vmatpush3.bf16.msra.mxu1 %v3365_v18  ;;  %3154 = vmatprep.mubr.msk.f32.mxu1 %vm3574_vm6, %v4794_v36 }
 0x58f   :  { %v2304_v25 = vand.u32 4294901760, %v2303_v48  ;;  %3367 = vmatprep.subr.bf16.mxu1 %v3569_v42 }
 0x591   :  { %v2305_v61 = vsub.f32 %v2303_v48, %v2304_v25 }
 0x593   :  { %v2306_v52 = vand.u32 4294901760, %v2305_v61 }
 0x595   :  { %3141 = vmatmul.mubr.f32.vlgmr.msra.gmra.mrb[2].mxu0 %v2306_v52  ;;  %3155 = vmatmul.mubr.f32.vlgmr.msra.gmra.mrb[4].mxu1 %v2303_v48 }
 0x596   :  { %3369 = vmatpush3.bf16.msra.mxu1 %v3359_v4  ;;  %3161 = vmatprep.mubr.msk.f32.mxu1 %vm3574_vm6, %v4794_v36 }
 0x597   :  { %3370 = vmatprep.subr.bf16.mxu1 %v3569_v42 }
 0x59d   :  { %3162 = vmatmul.mubr.f32.vlgmr.msra.gmra.mrb[4].mxu1 %v2304_v25 }
 0x59e   :  { %3372 = vmatpush3.bf16.msra.mxu1 %v3371_v44  ;;  %3168 = vmatprep.mubr.msk.f32.mxu1 %vm3574_vm6, %v4794_v36 }
 0x59f   :  { %3373 = vmatprep.subr.bf16.mxu1 %v3569_v42 }
 0x5a5   :  { %3169 = vmatmul.mubr.f32.vlgmr.msra.gmra.mrb[4].mxu1 %v2302_v43 }
 0x5a6   :  { %3375 = vmatpush3.bf16.msra.mxu1 %v3359_v4  ;;  %3175 = vmatprep.mubr.msk.f32.mxu1 %vm3574_vm6, %v4794_v36 }
 0x5ad   :  { %3176 = vmatmul.mubr.f32.vlgmr.msra.gmra.mrb[4].mxu1 %v2302_v43 }
 0x668   :  { %v2308_v21 = vpop.f32.mrb[2].mxu0 }
 0x669   :  { %v3142_v34 = vpop.f32.mrb[3].mxu0  ;;  %v2309_v24 = vadd.f32 %v2709_v38, %v2308_v21 }
 0x680   :  { %v2690_v3 = vpop.f32.mrb[4].mxu1 }
 0x681   :  { %v3380_v37 = vadd.f32 %v2690_v3, %v2309_v24  ;;  %v3177_v46 = vpop.f32.mrb[5].mxu1 }
 0x683   :  { %2694 = vst [vmem:[%s4726_s11] sm:$0xff] %v3380_v37 }
 0x684   :  { %2699 = vsyncpa [#allocation5], 1 }

</bundles_post_ra>
